<compile_context>
chip_gen: v6e
topology: v6e:2x2x1
jax: 0.10.0
libtpu: 0.0.40
codegen_flags: <defaults>
</compile_context>

<pallas_src>
from functools import partial

import numpy as np
import jax
import jax.numpy as jnp
from jax.experimental import pallas as pl
from jax.experimental.pallas import tpu as pltpu

N_FILT = 10     # conv_time / conv_space output channels
STRIDE = 3      # conv_time time stride (also the number of time "phases")
POOL = 6        # max-pool window / stride along time
HIGH = jax.lax.Precision.HIGHEST   # only for the pure-JAX reference / one-time prep


def conv_out(n, k, s=1):
    return (n - k) // s + 1


def round_up(x, m):
    return ((x + m - 1) // m) * m


def _elu(x):
    # F.elu with alpha=1; the discarded branch is clamped so exp never overflows.
    return jnp.where(x > 0.0, x, jnp.exp(jnp.minimum(x, 0.0)) - 1.0)


# ----------------------------- the fused kernel ------------------------------

def hscnn_kernel(patches_ref, wc_ref, w1_ref, b1_ref, w2_ref, b2_ref,
                 o_ref, feat2_ref, h_ref, *, W2u, Bp, NSp):
    """One frequency band per grid step.

    patches_ref : (POOL, W2u*Bp, CKp) bf16  im2col rows ordered (j, w2, b)
    wc_ref      : (CKp, NSp)          bf16  fused conv weights, 3 scales on lanes
    w1_ref      : (W2u*NSp, Hp)       f32   fc_layer1 weight in kernel row order
    b1_ref      : (1, Hp)
    w2_ref      : (Hp, NCp)
    b2_ref      : (1, NCp)
    o_ref       : (Bp, NCp)           logits, valid region [:B, :n_class]
    feat2_ref   : (Bp, W2u*NSp)       scratch: packed pooled features
    h_ref       : (Bp, Hp)            scratch: fc1 accumulator across bands
    """
    band = pl.program_id(0)

    @pl.when(band == 0)
    def _init():
        h_ref[...] = jnp.zeros_like(h_ref)

    # Fused conv_time∘conv_space for all 3 scales, one MXU dot per pool phase j;
    # the (1,6) max-pool is a register-resident max over the 6 phases (all slices
    # are aligned whole sublane groups, nothing round-trips through VMEM).
    wc = wc_ref[...]
    m = jnp.dot(patches_ref[0], wc, preferred_element_type=jnp.float32)
    for j in range(1, POOL):
        m = jnp.maximum(
            m, jnp.dot(patches_ref[j], wc, preferred_element_type=jnp.float32))
    feat = _elu(m)                       # (W2u*Bp, NSp); ELU∘max == max∘ELU (monotone)

    # Pack (w2, channel) jointly onto lanes: each source slice is one aligned
    # 8-row group, each destination a 128-aligned lane-dense block.
    for w2 in range(W2u):
        feat2_ref[:, w2 * NSp:(w2 + 1) * NSp] = feat[w2 * Bp:(w2 + 1) * Bp, :]

    # fc_layer1 contribution of this band: ONE matmul, accumulated across bands.
    h_ref[...] += jnp.dot(feat2_ref[...], w1_ref[...],
                          preferred_element_type=jnp.float32)

    # Last band: bias + ELU + fc_layer2 (dropout is never applied in forward).
    @pl.when(band == pl.num_programs(0) - 1)
    def _finish():
        hidden = _elu(h_ref[...] + b1_ref[...])
        o_ref[...] = jnp.dot(hidden, w2_ref[...],
                             preferred_element_type=jnp.float32) + b2_ref[...]


# ------------------- one-time weight preparation (not hot path) --------------

def prepare_params(params, n_chan, n_sample):
    """Fuse conv weights, pad/stack scales, pre-permute/reshape fc1. Run once."""
    bands = params['bands']
    n_band = len(bands)
    Ks = [int(wt.shape[-1]) for (wt, _) in bands[0]]
    n_scale = len(Ks)
    NS = n_scale * N_FILT
    NSp = round_up(NS, 128)

    W1s = [conv_out(n_sample, K, STRIDE) for K in Ks]
    W2s = [conv_out(W1, POOL, POOL) for W1 in W1s]
    W2u = max(W2s)                       # uniform (padded) pooled width
    Wc = POOL * W2u                      # conv positions computed per band
    Kmax = max(Ks)
    Q = -(-Kmax // STRIDE)               # taps per phase (ceil)
    T = Wc + Q - 1                       # phase-major time length
    C3 = STRIDE * n_chan
    CK = Q * C3
    CKp = round_up(CK, 128)              # contraction padded to lane multiple
    H = params['w1'].shape[1]
    Hp = round_up(H, 128)
    n_class = params['w2'].shape[1]
    NCp = round_up(n_class, 128)

    # Fused conv weights: row = q*C3 + c*3 + r, column = scale*10 + o, bf16.
    w_conv = []
    for band_params in bands:
        cols = []
        for (wt, ws) in band_params:
            K = int(wt.shape[-1])
            weff = jnp.einsum('oic,ik->ock', ws[:, :, :, 0], wt[:, 0, 0, :],
                              precision=HIGH)                       # (10, C, K)
            weff = jnp.pad(weff, ((0, 0), (0, 0), (0, STRIDE * Q - K)))
            rows = weff.reshape(N_FILT, n_chan, Q, STRIDE)          # [o, c, q, r]
            rows = jnp.transpose(rows, (2, 1, 3, 0)).reshape(CK, N_FILT)
            cols.append(rows)
        wb = jnp.concatenate(cols, axis=1)                          # (CK, NS)
        wb = jnp.pad(wb, ((0, CKp - CK), (0, NSp - NS)))
        w_conv.append(wb)
    w_conv = jnp.stack(w_conv, axis=0).astype(jnp.bfloat16)         # (n_band, CKp, NSp)

    # fc_layer1 weight: kernel row = w2*NSp + (scale*10 + o); rows for padded
    # pooled positions / padded channels stay zero so garbage never leaks in.
    w1_np = np.asarray(params['w1'], np.float32)
    band_size = sum(N_FILT * w2 for w2 in W2s)
    w1k = np.zeros((n_band, W2u, NSp, Hp), np.float32)
    for band in range(n_band):
        off = band * band_size
        for s, W2_s in enumerate(W2s):
            blk = w1_np[off: off + N_FILT * W2_s].reshape(N_FILT, W2_s, H)
            blk = np.transpose(blk, (1, 0, 2))                      # [w2, o, :]
            w1k[band, :W2_s, s * N_FILT:(s + 1) * N_FILT, :H] = blk
            off += N_FILT * W2_s
    w1k = jnp.asarray(w1k.reshape(n_band, W2u * NSp, Hp))

    b1p = jnp.zeros((1, Hp), jnp.float32).at[:, :H].set(params['b1'])
    w2p = jnp.zeros((Hp, NCp), jnp.float32).at[:H, :n_class].set(params['w2'])
    b2p = jnp.zeros((1, NCp), jnp.float32).at[:, :n_class].set(params['b2'])

    dims = dict(n_band=n_band, n_class=n_class, W2u=W2u, Wc=Wc, Q=Q, T=T,
                C3=C3, CK=CK, CKp=CKp, NS=NS, NSp=NSp, H=H, Hp=Hp, NCp=NCp)
    return dict(w_conv=w_conv, w1=w1k, b1=b1p, w2=w2p, b2=b2p, dims=dims)


# ------------------------------- forward --------------------------------------

def hscnn_forward(prepared, x):
    """x: (B, n_band, n_chan, n_sample) -> logits (B, n_class). One pallas_call."""
    d = prepared['dims']
    B, n_band, C, S = x.shape
    W2u, Q, T, C3 = d['W2u'], d['Q'], d['T'], d['C3']
    CK, CKp, NSp, Hp, NCp = d['CK'], d['CKp'], d['NSp'], d['Hp'], d['NCp']
    Wc = POOL * W2u
    Bp = round_up(B, 8)                  # pad batch to full sublane groups
    G = W2u * Bp
    S_pad = STRIDE * T

    # --- wrapper-side im2col (cheap XLA glue; nothing lane-misaligned in-kernel) ---
    if S_pad >= S:
        x_t = jnp.pad(x, ((0, 0), (0, 0), (0, 0), (0, S_pad - S)))
    else:
        x_t = x[..., :S_pad]
    # phase-major: x_ph[nb, b, t, c*3+r] = x[b, nb, c, 3t+r]
    x_ph = x_t.reshape(B, n_band, C, T, STRIDE)
    x_ph = jnp.transpose(x_ph, (1, 0, 3, 2, 4)).reshape(n_band, B, T, C3)
    # windows: win[nb, b, w, q*C3 + c3] = x_ph[nb, b, w+q, c3]
    win = jnp.stack([x_ph[:, :, q:q + Wc, :] for q in range(Q)], axis=3)
    win = win.reshape(n_band, B, W2u, POOL, CK)          # w = w2*POOL + j
    win = jnp.transpose(win, (0, 3, 2, 1, 4))            # (nb, j, w2, b, CK)
    win = jnp.pad(win, ((0, 0), (0, 0), (0, 0), (0, Bp - B), (0, CKp - CK)))
    patches = win.reshape(n_band, POOL, G, CKp).astype(jnp.bfloat16)

    kernel = partial(hscnn_kernel, W2u=W2u, Bp=Bp, NSp=NSp)

    grid_spec = pltpu.PrefetchScalarGridSpec(
        num_scalar_prefetch=0,
        grid=(n_band,),
        in_specs=[
            pl.BlockSpec((None, POOL, G, CKp), lambda b: (b, 0, 0, 0)),   # patches
            pl.BlockSpec((None, CKp, NSp), lambda b: (b, 0, 0)),          # conv w
            pl.BlockSpec((None, W2u * NSp, Hp), lambda b: (b, 0, 0)),     # fc1 w
            pl.BlockSpec((1, Hp), lambda b: (0, 0)),                      # fc1 b
            pl.BlockSpec((Hp, NCp), lambda b: (0, 0)),                    # fc2 w
            pl.BlockSpec((1, NCp), lambda b: (0, 0)),                     # fc2 b
        ],
        out_specs=pl.BlockSpec((Bp, NCp), lambda b: (0, 0)),
        scratch_shapes=[
            pltpu.VMEM((Bp, W2u * NSp), jnp.float32),   # packed pooled features
            pltpu.VMEM((Bp, Hp), jnp.float32),          # fc1 accumulator
        ],
    )

    out = pl.pallas_call(
        kernel,
        out_shape=jax.ShapeDtypeStruct((Bp, NCp), jnp.float32),
        grid_spec=grid_spec,
        compiler_params=pltpu.CompilerParams(dimension_semantics=("arbitrary",)),
    )(patches, prepared['w_conv'], prepared['w1'], prepared['b1'],
      prepared['w2'], prepared['b2'])
    return out[:B, :d['n_class']]


# -------------------------- deterministic params -----------------------------

def init_params(key, n_chan, n_sample, n_class, n_band=1, kernels=(85, 65, 45)):
    n_keys = n_band * len(kernels) * 2 + 4
    keys = iter(jax.random.split(key, n_keys))
    bands, band_size = [], 0
    for b in range(n_band):
        scales = []
        for K in kernels:
            wt = 0.1 * jax.random.normal(next(keys), (N_FILT, 1, 1, K), jnp.float32)
            ws = 0.1 * jax.random.normal(next(keys), (N_FILT, N_FILT, n_chan, 1),
                                         jnp.float32)
            scales.append((wt, ws))
            if b == 0:
                W2 = conv_out(conv_out(n_sample, K, STRIDE), POOL, POOL)
                band_size += N_FILT * W2
        bands.append(scales)
    in_feat = band_size * n_band
    w1 = 0.05 * jax.random.normal(next(keys), (in_feat, 100), jnp.float32)
    b1 = 0.05 * jax.random.normal(next(keys), (1, 100), jnp.float32)
    w2 = 0.05 * jax.random.normal(next(keys), (100, n_class), jnp.float32)
    b2 = 0.05 * jax.random.normal(next(keys), (1, n_class), jnp.float32)
    return {'bands': bands, 'w1': w1, 'b1': b1, 'w2': w2, 'b2': b2}


# ------------------------- pure-JAX reference (check) ------------------------

def ref_forward(params, x):
    B = x.shape[0]
    feats = []
    for b, band_params in enumerate(params['bands']):
        xb = x[:, b, :, :][:, None, :, :]                   # (B,1,C,S) NCHW
        for (wt, ws) in band_params:
            y = jax.lax.conv_general_dilated(
                xb, wt, (1, STRIDE), 'VALID',
                dimension_numbers=('NCHW', 'OIHW', 'NCHW'), precision=HIGH)
            y = jax.lax.conv_general_dilated(
                y, ws, (1, 1), 'VALID',
                dimension_numbers=('NCHW', 'OIHW', 'NCHW'), precision=HIGH)
            y = _elu(y)
            y = jax.lax.reduce_window(y, -jnp.inf, jax.lax.max,
                                      (1, 1, 1, POOL), (1, 1, 1, POOL), 'VALID')
            feats.append(y.reshape(B, -1))
    feat = jnp.concatenate(feats, axis=-1)
    h = _elu(feat @ params['w1'] + params['b1'])
    return h @ params['w2'] + params['b2']


# ----------------------------------- main ------------------------------------

if __name__ == "__main__":
    batch, n_band, n_chan, n_sample, n_class = 2, 1, 3, 250, 4

    key = jax.random.PRNGKey(0)
    k_par, k_x = jax.random.split(key)
    params = init_params(k_par, n_chan, n_sample, n_class, n_band=n_band)
    x = jax.random.normal(k_x, (batch, n_band, n_chan, n_sample), jnp.float32)

    prepared = prepare_params(params, n_chan, n_sample)     # one-time weight prep
    out = jax.block_until_ready(hscnn_forward(prepared, x))

    ref = jax.block_until_ready(ref_forward(params, x))
    assert out.shape == (batch, n_class)
    assert np.allclose(np.asarray(out), np.asarray(ref), atol=1e-2, rtol=1e-2)

    print("KERNEL_OK")
</pallas_src>

<mosaic_0001>
module attributes {stable_mosaic.version = 11 : i64} {
  func.func @hscnn_kernel(%arg0: i32, %arg1: memref<1x6x88x384xbf16, #tpu.memory_space<vmem>>, %arg2: memref<1x384x128xbf16, #tpu.memory_space<vmem>>, %arg3: memref<1x1408x128xf32, #tpu.memory_space<vmem>>, %arg4: memref<1x128xf32, #tpu.memory_space<vmem>>, %arg5: memref<128x128xf32, #tpu.memory_space<vmem>>, %arg6: memref<1x128xf32, #tpu.memory_space<vmem>>, %arg7: memref<8x128xf32, #tpu.memory_space<vmem>>, %arg8: memref<8x1408xf32, #tpu.memory_space<vmem>>, %arg9: memref<8x128xf32, #tpu.memory_space<vmem>>) attributes {dimension_semantics = [#tpu.dimension_semantics<arbitrary>], iteration_bounds = array<i64: 1>, scalar_prefetch = 0 : i64, scratch_operands = 2 : i64, tpu.core_type = #tpu.core_type<tc>, window_params = [{transform_indices = @transform_0, window_bounds = array<i64: 1, 6, 88, 384>}, {transform_indices = @transform_1, window_bounds = array<i64: 1, 384, 128>}, {transform_indices = @transform_2, window_bounds = array<i64: 1, 1408, 128>}, {pipeline_mode = #tpu.pipeline_mode<synchronous>, transform_indices = @transform_3, window_bounds = array<i64: 1, 128>}, {pipeline_mode = #tpu.pipeline_mode<synchronous>, transform_indices = @transform_4, window_bounds = array<i64: 128, 128>}, {pipeline_mode = #tpu.pipeline_mode<synchronous>, transform_indices = @transform_5, window_bounds = array<i64: 1, 128>}, {pipeline_mode = #tpu.pipeline_mode<synchronous>, transform_indices = @transform_6, window_bounds = array<i64: 8, 128>}]} {
    %c0_i32 = arith.constant 0 : i32
    %0 = arith.cmpi eq, %arg0, %c0_i32 : i32
    %1 = arith.extui %0 : i1 to i32
    %c0_i32_0 = arith.constant 0 : i32
    %2 = arith.cmpi ne, %1, %c0_i32_0 : i32
    scf.if %2 {
      %cst_54 = arith.constant 0.000000e+00 : f32
      %68 = vector.broadcast %cst_54 : f32 to vector<8x128xf32>
      %c0_55 = arith.constant 0 : index
      %c0_56 = arith.constant 0 : index
      %69 = vector.load %arg9[%c0_55, %c0_56] : memref<8x128xf32, #tpu.memory_space<vmem>>, vector<8x128xf32>
      tpu.vector_store %arg9[%c0_55, %c0_56], %68 {strides = array<i32>} : memref<8x128xf32, #tpu.memory_space<vmem>>, vector<8x128xf32>,
    } else {
    }
    %c0 = arith.constant 0 : index
    %c0_1 = arith.constant 0 : index
    %c0_2 = arith.constant 0 : index
    %3 = vector.load %arg2[%c0, %c0_1, %c0_2] : memref<1x384x128xbf16, #tpu.memory_space<vmem>>, vector<1x384x128xbf16>
    %4 = vector.shape_cast %3 : vector<1x384x128xbf16> to vector<384x128xbf16>
    %c0_3 = arith.constant 0 : index
    %c0_4 = arith.constant 0 : index
    %c0_5 = arith.constant 0 : index
    %c0_6 = arith.constant 0 : index
    %5 = vector.load %arg1[%c0_3, %c0_4, %c0_5, %c0_6] : memref<1x6x88x384xbf16, #tpu.memory_space<vmem>>, vector<1x1x88x384xbf16>
    %6 = vector.shape_cast %5 : vector<1x1x88x384xbf16> to vector<88x384xbf16>
    %cst = arith.constant dense<0.000000e+00> : vector<88x128xf32>
    %7 = tpu.matmul %6, %4, %cst {dimension_numbers = #tpu.dot_dimension_numbers<[1], [0], [0], [1], [0, 0, 1, 1], [], []>} : vector<88x384xbf16>, vector<384x128xbf16>, vector<88x128xf32> -> vector<88x128xf32>
    %c0_7 = arith.constant 0 : index
    %c1 = arith.constant 1 : index
    %c0_8 = arith.constant 0 : index
    %c0_9 = arith.constant 0 : index
    %8 = vector.load %arg1[%c0_7, %c1, %c0_8, %c0_9] : memref<1x6x88x384xbf16, #tpu.memory_space<vmem>>, vector<1x1x88x384xbf16>
    %9 = vector.shape_cast %8 : vector<1x1x88x384xbf16> to vector<88x384xbf16>
    %cst_10 = arith.constant dense<0.000000e+00> : vector<88x128xf32>
    %10 = tpu.matmul %9, %4, %cst_10 {dimension_numbers = #tpu.dot_dimension_numbers<[1], [0], [0], [1], [0, 0, 1, 1], [], []>} : vector<88x384xbf16>, vector<384x128xbf16>, vector<88x128xf32> -> vector<88x128xf32>
    %11 = arith.maximumf %7, %10 : vector<88x128xf32>
    %c0_11 = arith.constant 0 : index
    %c2 = arith.constant 2 : index
    %c0_12 = arith.constant 0 : index
    %c0_13 = arith.constant 0 : index
    %12 = vector.load %arg1[%c0_11, %c2, %c0_12, %c0_13] : memref<1x6x88x384xbf16, #tpu.memory_space<vmem>>, vector<1x1x88x384xbf16>
    %13 = vector.shape_cast %12 : vector<1x1x88x384xbf16> to vector<88x384xbf16>
    %cst_14 = arith.constant dense<0.000000e+00> : vector<88x128xf32>
    %14 = tpu.matmul %13, %4, %cst_14 {dimension_numbers = #tpu.dot_dimension_numbers<[1], [0], [0], [1], [0, 0, 1, 1], [], []>} : vector<88x384xbf16>, vector<384x128xbf16>, vector<88x128xf32> -> vector<88x128xf32>
    %15 = arith.maximumf %11, %14 : vector<88x128xf32>
    %c0_15 = arith.constant 0 : index
    %c3 = arith.constant 3 : index
    %c0_16 = arith.constant 0 : index
    %c0_17 = arith.constant 0 : index
    %16 = vector.load %arg1[%c0_15, %c3, %c0_16, %c0_17] : memref<1x6x88x384xbf16, #tpu.memory_space<vmem>>, vector<1x1x88x384xbf16>
    %17 = vector.shape_cast %16 : vector<1x1x88x384xbf16> to vector<88x384xbf16>
    %cst_18 = arith.constant dense<0.000000e+00> : vector<88x128xf32>
    %18 = tpu.matmul %17, %4, %cst_18 {dimension_numbers = #tpu.dot_dimension_numbers<[1], [0], [0], [1], [0, 0, 1, 1], [], []>} : vector<88x384xbf16>, vector<384x128xbf16>, vector<88x128xf32> -> vector<88x128xf32>
    %19 = arith.maximumf %15, %18 : vector<88x128xf32>
    %c0_19 = arith.constant 0 : index
    %c4 = arith.constant 4 : index
    %c0_20 = arith.constant 0 : index
    %c0_21 = arith.constant 0 : index
    %20 = vector.load %arg1[%c0_19, %c4, %c0_20, %c0_21] : memref<1x6x88x384xbf16, #tpu.memory_space<vmem>>, vector<1x1x88x384xbf16>
    %21 = vector.shape_cast %20 : vector<1x1x88x384xbf16> to vector<88x384xbf16>
    %cst_22 = arith.constant dense<0.000000e+00> : vector<88x128xf32>
    %22 = tpu.matmul %21, %4, %cst_22 {dimension_numbers = #tpu.dot_dimension_numbers<[1], [0], [0], [1], [0, 0, 1, 1], [], []>} : vector<88x384xbf16>, vector<384x128xbf16>, vector<88x128xf32> -> vector<88x128xf32>
    %23 = arith.maximumf %19, %22 : vector<88x128xf32>
    %c0_23 = arith.constant 0 : index
    %c5 = arith.constant 5 : index
    %c0_24 = arith.constant 0 : index
    %c0_25 = arith.constant 0 : index
    %24 = vector.load %arg1[%c0_23, %c5, %c0_24, %c0_25] : memref<1x6x88x384xbf16, #tpu.memory_space<vmem>>, vector<1x1x88x384xbf16>
    %25 = vector.shape_cast %24 : vector<1x1x88x384xbf16> to vector<88x384xbf16>
    %cst_26 = arith.constant dense<0.000000e+00> : vector<88x128xf32>
    %26 = tpu.matmul %25, %4, %cst_26 {dimension_numbers = #tpu.dot_dimension_numbers<[1], [0], [0], [1], [0, 0, 1, 1], [], []>} : vector<88x384xbf16>, vector<384x128xbf16>, vector<88x128xf32> -> vector<88x128xf32>
    %27 = arith.maximumf %23, %26 : vector<88x128xf32>
    %cst_27 = arith.constant 0.000000e+00 : f32
    %28 = vector.broadcast %cst_27 : f32 to vector<88x128xf32>
    %29 = arith.cmpf ogt, %27, %28 : vector<88x128xf32>
    %cst_28 = arith.constant 0.000000e+00 : f32
    %30 = vector.broadcast %cst_28 : f32 to vector<88x128xf32>
    %31 = arith.minimumf %27, %30 : vector<88x128xf32>
    %32 = math.exp %31 : vector<88x128xf32>
    %cst_29 = arith.constant 1.000000e+00 : f32
    %33 = vector.broadcast %cst_29 : f32 to vector<88x128xf32>
    %34 = arith.subf %32, %33 : vector<88x128xf32>
    %35 = arith.select %29, %27, %34 : vector<88x128xi1>, vector<88x128xf32>
    %36 = vector.extract_strided_slice %35 {offsets = [0, 0], sizes = [8, 128], strides = [1, 1]} : vector<88x128xf32> to vector<8x128xf32>
    %c0_30 = arith.constant 0 : index
    %c0_31 = arith.constant 0 : index
    %37 = vector.load %arg8[%c0_30, %c0_31] : memref<8x1408xf32, #tpu.memory_space<vmem>>, vector<8x128xf32>
    tpu.vector_store %arg8[%c0_30, %c0_31], %36 {strides = array<i32>} : memref<8x1408xf32, #tpu.memory_space<vmem>>, vector<8x128xf32>,
    %38 = vector.extract_strided_slice %35 {offsets = [8, 0], sizes = [8, 128], strides = [1, 1]} : vector<88x128xf32> to vector<8x128xf32>
    %c0_32 = arith.constant 0 : index
    %c128 = arith.constant 128 : index
    %39 = vector.load %arg8[%c0_32, %c128] : memref<8x1408xf32, #tpu.memory_space<vmem>>, vector<8x128xf32>
    tpu.vector_store %arg8[%c0_32, %c128], %38 {strides = array<i32>} : memref<8x1408xf32, #tpu.memory_space<vmem>>, vector<8x128xf32>,
    %40 = vector.extract_strided_slice %35 {offsets = [16, 0], sizes = [8, 128], strides = [1, 1]} : vector<88x128xf32> to vector<8x128xf32>
    %c0_33 = arith.constant 0 : index
    %c256 = arith.constant 256 : index
    %41 = vector.load %arg8[%c0_33, %c256] : memref<8x1408xf32, #tpu.memory_space<vmem>>, vector<8x128xf32>
    tpu.vector_store %arg8[%c0_33, %c256], %40 {strides = array<i32>} : memref<8x1408xf32, #tpu.memory_space<vmem>>, vector<8x128xf32>,
    %42 = vector.extract_strided_slice %35 {offsets = [24, 0], sizes = [8, 128], strides = [1, 1]} : vector<88x128xf32> to vector<8x128xf32>
    %c0_34 = arith.constant 0 : index
    %c384 = arith.constant 384 : index
    %43 = vector.load %arg8[%c0_34, %c384] : memref<8x1408xf32, #tpu.memory_space<vmem>>, vector<8x128xf32>
    tpu.vector_store %arg8[%c0_34, %c384], %42 {strides = array<i32>} : memref<8x1408xf32, #tpu.memory_space<vmem>>, vector<8x128xf32>,
    %44 = vector.extract_strided_slice %35 {offsets = [32, 0], sizes = [8, 128], strides = [1, 1]} : vector<88x128xf32> to vector<8x128xf32>
    %c0_35 = arith.constant 0 : index
    %c512 = arith.constant 512 : index
    %45 = vector.load %arg8[%c0_35, %c512] : memref<8x1408xf32, #tpu.memory_space<vmem>>, vector<8x128xf32>
    tpu.vector_store %arg8[%c0_35, %c512], %44 {strides = array<i32>} : memref<8x1408xf32, #tpu.memory_space<vmem>>, vector<8x128xf32>,
    %46 = vector.extract_strided_slice %35 {offsets = [40, 0], sizes = [8, 128], strides = [1, 1]} : vector<88x128xf32> to vector<8x128xf32>
    %c0_36 = arith.constant 0 : index
    %c640 = arith.constant 640 : index
    %47 = vector.load %arg8[%c0_36, %c640] : memref<8x1408xf32, #tpu.memory_space<vmem>>, vector<8x128xf32>
    tpu.vector_store %arg8[%c0_36, %c640], %46 {strides = array<i32>} : memref<8x1408xf32, #tpu.memory_space<vmem>>, vector<8x128xf32>,
    %48 = vector.extract_strided_slice %35 {offsets = [48, 0], sizes = [8, 128], strides = [1, 1]} : vector<88x128xf32> to vector<8x128xf32>
    %c0_37 = arith.constant 0 : index
    %c768 = arith.constant 768 : index
    %49 = vector.load %arg8[%c0_37, %c768] : memref<8x1408xf32, #tpu.memory_space<vmem>>, vector<8x128xf32>
    tpu.vector_store %arg8[%c0_37, %c768], %48 {strides = array<i32>} : memref<8x1408xf32, #tpu.memory_space<vmem>>, vector<8x128xf32>,
    %50 = vector.extract_strided_slice %35 {offsets = [56, 0], sizes = [8, 128], strides = [1, 1]} : vector<88x128xf32> to vector<8x128xf32>
    %c0_38 = arith.constant 0 : index
    %c896 = arith.constant 896 : index
    %51 = vector.load %arg8[%c0_38, %c896] : memref<8x1408xf32, #tpu.memory_space<vmem>>, vector<8x128xf32>
    tpu.vector_store %arg8[%c0_38, %c896], %50 {strides = array<i32>} : memref<8x1408xf32, #tpu.memory_space<vmem>>, vector<8x128xf32>,
    %52 = vector.extract_strided_slice %35 {offsets = [64, 0], sizes = [8, 128], strides = [1, 1]} : vector<88x128xf32> to vector<8x128xf32>
    %c0_39 = arith.constant 0 : index
    %c1024 = arith.constant 1024 : index
    %53 = vector.load %arg8[%c0_39, %c1024] : memref<8x1408xf32, #tpu.memory_space<vmem>>, vector<8x128xf32>
    tpu.vector_store %arg8[%c0_39, %c1024], %52 {strides = array<i32>} : memref<8x1408xf32, #tpu.memory_space<vmem>>, vector<8x128xf32>,
    %54 = vector.extract_strided_slice %35 {offsets = [72, 0], sizes = [8, 128], strides = [1, 1]} : vector<88x128xf32> to vector<8x128xf32>
    %c0_40 = arith.constant 0 : index
    %c1152 = arith.constant 1152 : index
    %55 = vector.load %arg8[%c0_40, %c1152] : memref<8x1408xf32, #tpu.memory_space<vmem>>, vector<8x128xf32>
    tpu.vector_store %arg8[%c0_40, %c1152], %54 {strides = array<i32>} : memref<8x1408xf32, #tpu.memory_space<vmem>>, vector<8x128xf32>,
    %56 = vector.extract_strided_slice %35 {offsets = [80, 0], sizes = [8, 128], strides = [1, 1]} : vector<88x128xf32> to vector<8x128xf32>
    %c0_41 = arith.constant 0 : index
    %c1280 = arith.constant 1280 : index
    %57 = vector.load %arg8[%c0_41, %c1280] : memref<8x1408xf32, #tpu.memory_space<vmem>>, vector<8x128xf32>
    tpu.vector_store %arg8[%c0_41, %c1280], %56 {strides = array<i32>} : memref<8x1408xf32, #tpu.memory_space<vmem>>, vector<8x128xf32>,
    %c0_42 = arith.constant 0 : index
    %c0_43 = arith.constant 0 : index
    %58 = vector.load %arg9[%c0_42, %c0_43] : memref<8x128xf32, #tpu.memory_space<vmem>>, vector<8x128xf32>
    %c0_44 = arith.constant 0 : index
    %c0_45 = arith.constant 0 : index
    %59 = vector.load %arg8[%c0_44, %c0_45] : memref<8x1408xf32, #tpu.memory_space<vmem>>, vector<8x1408xf32>
    %c0_46 = arith.constant 0 : index
    %c0_47 = arith.constant 0 : index
    %c0_48 = arith.constant 0 : index
    %60 = vector.load %arg3[%c0_46, %c0_47, %c0_48] : memref<1x1408x128xf32, #tpu.memory_space<vmem>>, vector<1x1408x128xf32>
    %61 = vector.shape_cast %60 : vector<1x1408x128xf32> to vector<1408x128xf32>
    %cst_49 = arith.constant dense<0.000000e+00> : vector<8x128xf32>
    %62 = tpu.matmul %59, %61, %cst_49 {dimension_numbers = #tpu.dot_dimension_numbers<[1], [0], [0], [1], [0, 0, 1, 1], [], []>} : vector<8x1408xf32>, vector<1408x128xf32>, vector<8x128xf32> -> vector<8x128xf32>
    %63 = arith.addf %58, %62 : vector<8x128xf32>
    %c0_50 = arith.constant 0 : index
    %c0_51 = arith.constant 0 : index
    %64 = vector.load %arg9[%c0_50, %c0_51] : memref<8x128xf32, #tpu.memory_space<vmem>>, vector<8x128xf32>
    tpu.vector_store %arg9[%c0_50, %c0_51], %63 {strides = array<i32>} : memref<8x128xf32, #tpu.memory_space<vmem>>, vector<8x128xf32>,
    %c0_i32_52 = arith.constant 0 : i32
    %65 = arith.cmpi eq, %arg0, %c0_i32_52 : i32
    %66 = arith.extui %65 : i1 to i32
    %c0_i32_53 = arith.constant 0 : i32
    %67 = arith.cmpi ne, %66, %c0_i32_53 : i32
    scf.if %67 {
      %c0_54 = arith.constant 0 : index
      %c0_55 = arith.constant 0 : index
      %68 = vector.load %arg9[%c0_54, %c0_55] : memref<8x128xf32, #tpu.memory_space<vmem>>, vector<8x128xf32>
      %c0_56 = arith.constant 0 : index
      %c0_57 = arith.constant 0 : index
      %69 = vector.load %arg4[%c0_56, %c0_57] : memref<1x128xf32, #tpu.memory_space<vmem>>, vector<1x128xf32>
      %70 = vector.broadcast %69 : vector<1x128xf32> to vector<8x128xf32>
      %71 = arith.addf %68, %70 : vector<8x128xf32>
      %cst_58 = arith.constant 0.000000e+00 : f32
      %72 = vector.broadcast %cst_58 : f32 to vector<8x128xf32>
      %73 = arith.cmpf ogt, %71, %72 : vector<8x128xf32>
      %cst_59 = arith.constant 0.000000e+00 : f32
      %74 = vector.broadcast %cst_59 : f32 to vector<8x128xf32>
      %75 = arith.minimumf %71, %74 : vector<8x128xf32>
      %76 = math.exp %75 : vector<8x128xf32>
      %cst_60 = arith.constant 1.000000e+00 : f32
      %77 = vector.broadcast %cst_60 : f32 to vector<8x128xf32>
      %78 = arith.subf %76, %77 : vector<8x128xf32>
      %79 = arith.select %73, %71, %78 : vector<8x128xi1>, vector<8x128xf32>
      %c0_61 = arith.constant 0 : index
      %c0_62 = arith.constant 0 : index
      %80 = vector.load %arg5[%c0_61, %c0_62] : memref<128x128xf32, #tpu.memory_space<vmem>>, vector<128x128xf32>
      %cst_63 = arith.constant dense<0.000000e+00> : vector<8x128xf32>
      %81 = tpu.matmul %79, %80, %cst_63 {dimension_numbers = #tpu.dot_dimension_numbers<[1], [0], [0], [1], [0, 0, 1, 1], [], []>} : vector<8x128xf32>, vector<128x128xf32>, vector<8x128xf32> -> vector<8x128xf32>
      %c0_64 = arith.constant 0 : index
      %c0_65 = arith.constant 0 : index
      %82 = vector.load %arg6[%c0_64, %c0_65] : memref<1x128xf32, #tpu.memory_space<vmem>>, vector<1x128xf32>
      %83 = vector.broadcast %82 : vector<1x128xf32> to vector<8x128xf32>
      %84 = arith.addf %81, %83 : vector<8x128xf32>
      %c0_66 = arith.constant 0 : index
      %c0_67 = arith.constant 0 : index
      %85 = vector.load %arg7[%c0_66, %c0_67] : memref<8x128xf32, #tpu.memory_space<vmem>>, vector<8x128xf32>
      tpu.vector_store %arg7[%c0_66, %c0_67], %84 {strides = array<i32>} : memref<8x128xf32, #tpu.memory_space<vmem>>, vector<8x128xf32>,
    } else {
    }
    return
  }
  func.func @transform_0(%arg0: i32) -> (i32, i32, i32, i32) {
    %c0_i32 = arith.constant 0 : i32
    %c0_i32_0 = arith.constant 0 : i32
    %c0_i32_1 = arith.constant 0 : i32
    %c0_i32_2 = arith.constant 0 : i32
    return %arg0, %c0_i32, %c0_i32_0, %c0_i32_1 : i32, i32, i32, i32
  }
  func.func @transform_1(%arg0: i32) -> (i32, i32, i32) {
    %c0_i32 = arith.constant 0 : i32
    %c0_i32_0 = arith.constant 0 : i32
    %c0_i32_1 = arith.constant 0 : i32
    return %arg0, %c0_i32, %c0_i32_0 : i32, i32, i32
  }
  func.func @transform_2(%arg0: i32) -> (i32, i32, i32) {
    %c0_i32 = arith.constant 0 : i32
    %c0_i32_0 = arith.constant 0 : i32
    %c0_i32_1 = arith.constant 0 : i32
    return %arg0, %c0_i32, %c0_i32_0 : i32, i32, i32
  }
  func.func @transform_3(%arg0: i32) -> (i32, i32) {
    %c0_i32 = arith.constant 0 : i32
    %c0_i32_0 = arith.constant 0 : i32
    %c0_i32_1 = arith.constant 0 : i32
    return %c0_i32, %c0_i32_0 : i32, i32
  }
  func.func @transform_4(%arg0: i32) -> (i32, i32) {
    %c0_i32 = arith.constant 0 : i32
    %c0_i32_0 = arith.constant 0 : i32
    %c0_i32_1 = arith.constant 0 : i32
    return %c0_i32, %c0_i32_0 : i32, i32
  }
  func.func @transform_5(%arg0: i32) -> (i32, i32) {
    %c0_i32 = arith.constant 0 : i32
    %c0_i32_0 = arith.constant 0 : i32
    %c0_i32_1 = arith.constant 0 : i32
    return %c0_i32, %c0_i32_0 : i32, i32
  }
  func.func @transform_6(%arg0: i32) -> (i32, i32) {
    %c0_i32 = arith.constant 0 : i32
    %c0_i32_0 = arith.constant 0 : i32
    %c0_i32_1 = arith.constant 0 : i32
    return %c0_i32, %c0_i32_0 : i32, i32
  }
}

</mosaic_0001>

<bundles_post_ra>
// kernel: tpu_custom_call.1
= control target key start
LH: loop header
LB: loop body
LE: loop exit
PB: predicated region body
PF: predicated region fallthrough
CT: control target
= control target key end

     0   :  { %11 = vsyncpa [#allocation5], 0  ;;  %s4755_s0 = inlined_call_operand.hbm [shape: bf16[1,6,88,384], index: 0, kind: input, shape index: {}]   ;;  %s4756_s1 = inlined_call_operand.hbm [shape: bf16[1,384,128], index: 1, kind: input, shape index: {}]   ;;  %s4757_s2 = inlined_call_operand.hbm [shape: f32[1,1408,128], index: 2, kind: input, shape index: {}]   ;;  %s4758_s3 = inlined_call_operand.vmem [shape: f32[1,128], index: 3, kind: input, shape index: {}]   ;;  %s4759_s4 = inlined_call_operand.hbm [shape: f32[128,128], index: 4, kind: input, shape index: {}]   ;;  %s4760_s5 = inlined_call_operand.vmem [shape: f32[1,128], index: 5, kind: input, shape index: {}]   ;;  %s4761_s6 = inlined_call_operand.hbm [shape: f32[8,128], index: 6, kind: output, shape index: {}]  }
   0x1   :  { %12 = vsyncpa [#allocation8], 0 }
   0x2   :  { %13 = vsyncpa [#allocation11], 0 }
   0x3   :  { %14 = vsyncpa [#allocation6], 0  ;;  %s4088_s21 = smov [#allocation7]  }
   0x4   :  { %s32_s22 = sshll.u32 %s4088_s21, 4  ;;  %s33_s22 = int_to_ptr.vmem [resolvable:$true] %s32_s22 }
   0x5   :  { %s3988_s23 = scalar_lea.vmem %s33_s22, 3072  ;;  %p3993_p1 = scmp.lt.s32.totalorder %s33_s22, %s33_s22 }
   0x6   :  { %p3989_p0 = scmp.ne.s32.totalorder %s33_s22, %s3988_s23  ;;  %p3994_p2 = scmp.lt.s32.totalorder %s3988_s23, %s3988_s23 }
   0x8   :  { %p3995_p3 = por %p3994_p2, %p3993_p1 }
   0xa   :  { %p3996_p4 = pnand %p3995_p3, %p3989_p0 }
   0xc   :  { %3999 = shalt.err (!%p3996_p4)
}
   0xd   :  { %s4089_s24 = smov 64   ;;  %s4090_s25 = smov 4  }
   0xe   :  { %38 = dma.hbm_to_vmem [thread:$0]  %s4756_s1, 3072, %s33_s22, [#allocation8], %s4089_s24, %s4089_s24, %s4090_s25  }
   0xf   :  { %s4091_s28 = smov [#allocation4]  }
  0x10   :  { %s20_s29 = sshll.u32 %s4091_s28, 4  ;;  %s21_s29 = int_to_ptr.vmem [resolvable:$true] %s20_s29 }
  0x11   :  { %s4008_s30 = scalar_lea.vmem %s21_s29, 12672  ;;  %p4013_p6 = scmp.lt.s32.totalorder %s21_s29, %s21_s29 }
  0x12   :  { %p4009_p5 = scmp.ne.s32.totalorder %s21_s29, %s4008_s30  ;;  %p4014_p7 = scmp.lt.s32.totalorder %s4008_s30, %s4008_s30 }
  0x14   :  { %p4015_p8 = por %p4014_p7, %p4013_p6 }
  0x16   :  { %p4016_p9 = pnand %p4015_p8, %p4009_p5 }
  0x18   :  { %4019 = shalt.err (!%p4016_p9)
}
  0x19   :  { %s4092_s7 = smov 192   ;;  %s4093_s8 = smov 12  }
  0x1a   :  { %26 = dma.hbm_to_vmem [thread:$0]  %s4755_s0, 12672, %s21_s29, [#allocation5], %s4092_s7, %s4092_s7, %s4093_s8  }
  0x1b   :  { %s4094_s11 = smov [#allocation9]  }
  0x1c   :  { %s44_s12 = sshll.u32 %s4094_s11, 4  ;;  %s45_s12 = int_to_ptr.vmem [resolvable:$true] %s44_s12 }
  0x1d   :  { %s4028_s1 = scalar_lea.vmem %s45_s12, 22528  ;;  %p4033_p11 = scmp.lt.s32.totalorder %s45_s12, %s45_s12 }
  0x1e   :  { %p4029_p10 = scmp.ne.s32.totalorder %s45_s12, %s4028_s1  ;;  %p4034_p12 = scmp.lt.s32.totalorder %s4028_s1, %s4028_s1 }
  0x20   :  { %p4035_p13 = por %p4034_p12, %p4033_p11 }
  0x22   :  { %p4036_p0 = pnand %p4035_p13, %p4029_p10 }
  0x24   :  { %4039 = shalt.err (!%p4036_p0)
}
  0x25   :  { %s4095_s13 = smov 128   ;;  %s4096_s14 = smov 8  }
  0x26   :  { %50 = dma.hbm_to_vmem [thread:$0]  %s4757_s2, 22528, %s45_s12, [#allocation8], %s4095_s13, %s4095_s13, %s4096_s14  }
  0x27   :  { %s4097_s17 = smov [#allocation10]  }
  0x28   :  { %s58_s18 = sshll.u32 %s4097_s17, 4  ;;  %s59_s18 = int_to_ptr.vmem [resolvable:$true] %s58_s18 }
  0x29   :  { %s4048_s0 = scalar_lea.vmem %s59_s18, 2048  ;;  %p4053_p2 = scmp.lt.s32.totalorder %s59_s18, %s59_s18 }
  0x2a   :  { %p4049_p1 = scmp.ne.s32.totalorder %s59_s18, %s4048_s0  ;;  %p4054_p3 = scmp.lt.s32.totalorder %s4048_s0, %s4048_s0 }
  0x2c   :  { %p4055_p4 = por %p4054_p3, %p4053_p2 }
  0x2e   :  { %p4056_p5 = pnand %p4055_p4, %p4049_p1 }
  0x30   :  { %4059 = shalt.err (!%p4056_p5)
}
  0x31   :  { %64 = dma.hbm_to_vmem [thread:$0]  %s4759_s4, 2048, %s59_s18, [#allocation11], %s4095_s13, %s4095_s13, %s4096_s14  }
  0x32   :  { %4080 = dma.done.wait [#allocation5], 12672  }
  0x33   :  { %4081 = vsyncadd [#allocation5], 4294954624 }
  0x34   :  { %4082 = dma.done.wait [#allocation8], 25600  }
  0x35   :  { %4083 = vsyncadd [#allocation8], 4294941696 }
  0x36   :  { %4084 = dma.done.wait [#allocation11], 2048  }
  0x37   :  { %4085 = vsyncadd [#allocation11], 4294965248  ;;  %v4148_v0 = vld [vmem:[#allocation7 + $0x78] sm:$0xff]   ;;  %v4156_v3 = vld [vmem:[#allocation7 + $0x70] sm:$0xff]   ;;  %vm4099_vm11 = vmmov 0   ;;  %s4100_s23 = smov [#allocation12]  }
  0x38   :  { %v4150_v1 = vld [vmem:[#allocation7 + $0xb8] sm:$0xff]   ;;  %2937 = vmatprep.subr.bf16.mxu0 %v4148_v0  ;;  %v4160_v4 = vld [vmem:[#allocation7 + $0xb0] sm:$0xff]   ;;  %v4166_v6 = vld [vmem:[#allocation7 + $0x68] sm:$0xff]   ;;  %s2780_s24 = sshll.u32 %s4100_s23, 4  ;;  %s2781_s24 = int_to_ptr.vmem [resolvable:$true] %s2780_s24 }
  0x39   :  { %v4153_v2 = vld [vmem:[#allocation7 + $0x38] sm:$0xff]   ;;  %3542 = vmatprep.subr.bf16.mxu1 %v4150_v1  ;;  %v4163_v5 = vld [vmem:[#allocation7 + $0x30] sm:$0xff]   ;;  %v4168_v7 = vld [vmem:[#allocation7 + $0xa8] sm:$0xff]   ;;  %p4065_p7 = scmp.lt.s32.totalorder %s2781_s24, %s2781_s24 }
  0x3a   :  { %2938 = vmatpush3.bf16.msra.mxu0 %v4153_v2  ;;  %3543 = vmatpush3.bf16.msra.mxu1 %v4150_v1  ;;  %v4172_v8 = vld [vmem:[#allocation7 + $0x28] sm:$0xff]   ;;  %v4176_v9 = vld [vmem:[#allocation7 + $0x60] sm:$0xff]   ;;  %v4184_v12 = vld [vmem:[#allocation7 + $0x58] sm:$0xff]  }
  0x3b   :  { %2939 = vmatprep.subr.bf16.mxu0 %v4156_v3  ;;  %3544 = vmatprep.subr.bf16.mxu1 %v4160_v4  ;;  %v4178_v10 = vld [vmem:[#allocation7 + $0xa0] sm:$0xff]   ;;  %v4188_v13 = vld [vmem:[#allocation7 + $0x98] sm:$0xff]   ;;  %v4194_v15 = vld [vmem:[#allocation7 + $0x50] sm:$0xff]  }
  0x3c   :  { %v4180_v11 = vld [vmem:[#allocation7 + $0x20] sm:$0xff]   ;;  %v4190_v14 = vld [vmem:[#allocation7 + $0x18] sm:$0xff]   ;;  %v4198_v16 = vld [vmem:[#allocation7 + $0x90] sm:$0xff]  }
  0x3d   :  { %v4200_v17 = vld [vmem:[#allocation7 + $0x10] sm:$0xff]   ;;  %v4204_v18 = vld [vmem:[#allocation7 + $0x48] sm:$0xff]   ;;  %v4212_v21 = vld [vmem:[#allocation7 + $0x40] sm:$0xff]  }
  0x3e   :  { %2940 = vmatpush3.bf16.msra.mxu0 %v4163_v5  ;;  %3545 = vmatpush3.bf16.msra.mxu1 %v4160_v4  ;;  %v4208_v19 = vld [vmem:[#allocation7 + $0x88] sm:$0xff]   ;;  %v4216_v22 = vld [vmem:[#allocation7 + $0x80] sm:$0xff]   ;;  %v3820_v24 = vld [vmem:[#allocation4 + $0x8] ss:$12 sps:$4 sm:$0xff]  }
  0x3f   :  { %2941 = vmatprep.subr.bf16.mxu0 %v4166_v6  ;;  %3546 = vmatprep.subr.bf16.mxu1 %v4168_v7  ;;  %v4210_v20 = vld [vmem:[#allocation7 + $0x8] sm:$0xff]   ;;  %v4222_v25 = vld [vmem:[#allocation7] sm:$0xff]   ;;  %v3832_v33 = vld [vmem:[#allocation4 + $0x68] ss:$12 sps:$4 sm:$0xff]  }
  0x40   :  { %v3819_v23 = vld [vmem:[#allocation4 + $0x4] ss:$12 sps:$4 sm:$0xff]   ;;  %v3817_v26 = vld [vmem:[#allocation4] ss:$12 sps:$4 sm:$0xff]   ;;  %3558 = vmatprep.mubr.bf16.mxu1 %v3820_v24  ;;  %v3822_v28 = vld [vmem:[#allocation4 + $0x1c] ss:$12 sps:$4 sm:$0xff]  }
  0x41   :  { %422 = vmatprep.mubr.bf16.mxu0 %v3819_v23  ;;  %v3821_v27 = vld [vmem:[#allocation4 + $0x20] ss:$12 sps:$4 sm:$0xff]   ;;  %v3827_v29 = vld [vmem:[#allocation4 + $0x38] ss:$12 sps:$4 sm:$0xff]   ;;  %v3829_v31 = vld [vmem:[#allocation4 + $0x50] ss:$12 sps:$4 sm:$0xff]  }
  0x42   :  { %2942 = vmatpush3.bf16.msra.mxu0 %v4172_v8  ;;  %3547 = vmatpush3.bf16.msra.mxu1 %v4168_v7  ;;  %v3824_v30 = vld [vmem:[#allocation4 + $0x18] ss:$12 sps:$4 sm:$0xff]   ;;  %v3825_v32 = vld [vmem:[#allocation4 + $0x34] ss:$12 sps:$4 sm:$0xff]   ;;  %v3828_v34 = vld [vmem:[#allocation4 + $0x30] ss:$12 sps:$4 sm:$0xff]  }
  0x43   :  { %2943 = vmatprep.subr.bf16.mxu0 %v4176_v9  ;;  %3548 = vmatprep.subr.bf16.mxu1 %v4178_v10  ;;  %v3834_v35 = vld [vmem:[#allocation4 + $0x80] ss:$0 sps:$4 sm:$0xff]   ;;  %v3830_v36 = vld [vmem:[#allocation4 + $0x4c] ss:$12 sps:$4 sm:$0xff]   ;;  %v3839_v37 = vld [vmem:[#allocation4 + $0x88] ss:$12 sps:$4 sm:$0xff]  }
  0x44   :  { %v3833_v38 = vld [vmem:[#allocation4 + $0x48] ss:$12 sps:$4 sm:$0xff]   ;;  %v3835_v39 = vld [vmem:[#allocation4 + $0x64] ss:$12 sps:$4 sm:$0xff]   ;;  %v153_v40 = vld [vmem:[#allocation4 + $0x78] sm:$0xff] }
  0x45   :  { %v3837_v41 = vld [vmem:[#allocation4 + $0x84] ss:$12 sps:$4 sm:$0xff]   ;;  %v3840_v42 = vld [vmem:[#allocation4 + $0x60] ss:$12 sps:$4 sm:$0xff]   ;;  %v2807_v43 = vcombine.high %v153_v40, %v153_v40  ;;  %v2806_v45 = vcombine.low %v153_v40, %v153_v40  ;;  %v3845_v46 = vld [vmem:[#allocation4 + $0x9c] ss:$12 sps:$4 sm:$0xff]  }
  0x46   :  { %2944 = vmatpush3.bf16.msra.mxu0 %v4180_v11  ;;  %3549 = vmatpush3.bf16.msra.mxu1 %v4178_v10  ;;  %v3842_v44 = vld [vmem:[#allocation4 + $0xa0] ss:$12 sps:$4 sm:$0xff]   ;;  %v3846_v47 = vld [vmem:[#allocation4 + $0xb8] ss:$12 sps:$4 sm:$0xff]   ;;  %v3851_v51 = vld [vmem:[#allocation4 + $0xd0] ss:$12 sps:$4 sm:$0xff]  }
  0x47   :  { %2945 = vmatprep.subr.bf16.mxu0 %v4184_v12  ;;  %3550 = vmatprep.subr.bf16.mxu1 %v4188_v13  ;;  %v3848_v48 = vld [vmem:[#allocation4 + $0x8c] ss:$12 sps:$4 sm:$0xff]   ;;  %v3849_v49 = vld [vmem:[#allocation4 + $0xb4] ss:$12 sps:$4 sm:$0xff]   ;;  %v3850_v50 = vld [vmem:[#allocation4 + $0xa4] ss:$12 sps:$4 sm:$0xff]  }
  0x48   :  { %v3853_v52 = vld [vmem:[#allocation4 + $0xbc] ss:$12 sps:$4 sm:$0xff]   ;;  %v3854_v53 = vld [vmem:[#allocation4 + $0xcc] ss:$12 sps:$4 sm:$0xff]   ;;  %v3855_v54 = vld [vmem:[#allocation4 + $0xd4] ss:$12 sps:$4 sm:$0xff]  }
  0x49   :  { %v3856_v55 = vld [vmem:[#allocation4 + $0xe8] ss:$12 sps:$4 sm:$0xff]   ;;  %v3859_v56 = vld [vmem:[#allocation4 + $0xec] ss:$12 sps:$4 sm:$0xff]   ;;  %v571_v57 = vld [vmem:[#allocation4 + $0xfc] sm:$0xff] }
  0x4a   :  { %2946 = vmatpush3.bf16.msra.mxu0 %v4190_v14  ;;  %3551 = vmatpush3.bf16.msra.mxu1 %v4188_v13  ;;  %v3858_v58 = vld [vmem:[#allocation4 + $0xe4] ss:$12 sps:$4 sm:$0xff]   ;;  %v2849_v60 = vcombine.high %v571_v57, %v571_v57  ;;  %v3865_v61 = vld [vmem:[#allocation4 + $0x10c] ss:$12 sps:$4 sm:$0xff]   ;;  %v2848_v62 = vcombine.low %v571_v57, %v571_v57  ;;  %v3863_v23 = vld [vmem:[#allocation4 + $0x108] ss:$12 sps:$4 sm:$0xff]  }
  0x4b   :  { %2947 = vmatprep.subr.bf16.mxu0 %v4194_v15  ;;  %3552 = vmatprep.subr.bf16.mxu1 %v4198_v16  ;;  %v3860_v59 = vld [vmem:[#allocation4 + $0x104] ss:$0 sps:$4 sm:$0xff]   ;;  %v3866_v63 = vld [vmem:[#allocation4 + $0x110] ss:$12 sps:$4 sm:$0xff]   ;;  %v3867_v24 = vld [vmem:[#allocation4 + $0x128] ss:$12 sps:$4 sm:$0xff]  }
  0x4c   :  { %v3886_v40 = vld [vmem:[#allocation4 + $0x168] ss:$12 sps:$4 sm:$0xff]   ;;  %v3906_v57 = vld [vmem:[#allocation4 + $0x20c] ss:$0 sps:$4 sm:$0xff]  }
  0x4e   :  { %2948 = vmatpush3.bf16.msra.mxu0 %v4200_v17  ;;  %3553 = vmatpush3.bf16.msra.mxu1 %v4198_v16 }
  0x4f   :  { %2949 = vmatprep.subr.bf16.mxu0 %v4204_v18  ;;  %3554 = vmatprep.subr.bf16.mxu1 %v4208_v19 }
  0x52   :  { %2950 = vmatpush3.bf16.msra.mxu0 %v4210_v20  ;;  %3555 = vmatpush3.bf16.msra.mxu1 %v4208_v19 }
  0x53   :  { %2951 = vmatprep.subr.bf16.mxu0 %v4212_v21  ;;  %3556 = vmatprep.subr.bf16.mxu1 %v4216_v22 }
  0x56   :  { %2952 = vmatpush3.bf16.msra.mxu0 %v4222_v25  ;;  %3557 = vmatpush3.bf16.msra.mxu1 %v4216_v22 }
  0x57   :  { %3003 = vmatprep.subr.bf16.mxu1 %v4148_v0  ;;  %3570 = vmatprep.subr.bf16.mxu0 %v4150_v1 }
  0x59   :  { %423 = vmatmul.mubr.bf16.vlgmr.msra.gmra.mxu0 %v3817_v26  ;;  %3559 = vmatmul.mubr.bf16.vlgmr.msra.gmra.mxu1 %v3821_v27  ;;  %v3868_v26 = vld [vmem:[#allocation4 + $0x124] ss:$12 sps:$4 sm:$0xff]   ;;  %v3873_v27 = vld [vmem:[#allocation4 + $0x140] ss:$12 sps:$4 sm:$0xff]  }
  0x5a   :  { %3004 = vmatpush3.bf16.msra.mxu1 %v4153_v2  ;;  %3571 = vmatpush3.bf16.msra.mxu0 %v4150_v1 }
  0x5b   :  { %3005 = vmatprep.subr.bf16.mxu1 %v4156_v3  ;;  %3572 = vmatprep.subr.bf16.mxu0 %v4160_v4 }
  0x5c   :  { %430 = vmatprep.mubr.bf16.mxu0 %v3822_v28  ;;  %3562 = vmatprep.mubr.bf16.mxu1 %v3827_v29  ;;  %v3870_v28 = vld [vmem:[#allocation4 + $0x120] ss:$12 sps:$4 sm:$0xff]   ;;  %v3875_v29 = vld [vmem:[#allocation4 + $0x158] ss:$12 sps:$4 sm:$0xff]  }
  0x5e   :  { %3006 = vmatpush3.bf16.msra.mxu1 %v4163_v5  ;;  %3573 = vmatpush3.bf16.msra.mxu0 %v4160_v4 }
  0x5f   :  { %3007 = vmatprep.subr.bf16.mxu1 %v4166_v6  ;;  %3574 = vmatprep.subr.bf16.mxu0 %v4168_v7 }
  0x61   :  { %431 = vmatmul.mubr.bf16.gmra.mxu0 %v3824_v30  ;;  %3563 = vmatmul.mubr.bf16.gmra.mxu1 %v3829_v31  ;;  %v3871_v30 = vld [vmem:[#allocation4 + $0x13c] ss:$12 sps:$4 sm:$0xff]  }
  0x62   :  { %3008 = vmatpush3.bf16.msra.mxu1 %v4172_v8  ;;  %3575 = vmatpush3.bf16.msra.mxu0 %v4168_v7  ;;  %v3878_v31 = vld [vmem:[#allocation4 + $0x170] ss:$12 sps:$4 sm:$0xff]  }
  0x63   :  { %3009 = vmatprep.subr.bf16.mxu1 %v4176_v9  ;;  %438 = vmatprep.mubr.bf16.mxu0 %v3825_v32  ;;  %v3874_v32 = vld [vmem:[#allocation4 + $0x138] ss:$12 sps:$4 sm:$0xff]  }
  0x64   :  { %3576 = vmatprep.subr.bf16.mxu0 %v4178_v10  ;;  %3566 = vmatprep.mubr.bf16.mxu1 %v3832_v33  ;;  %v3880_v33 = vld [vmem:[#allocation4 + $0x188] ss:$0 sps:$4 sm:$0xff]  }
  0x66   :  { %3010 = vmatpush3.bf16.msra.mxu1 %v4180_v11  ;;  %3577 = vmatpush3.bf16.msra.mxu0 %v4178_v10 }
  0x67   :  { %3011 = vmatprep.subr.bf16.mxu1 %v4184_v12  ;;  %3578 = vmatprep.subr.bf16.mxu0 %v4188_v13 }
  0x69   :  { %439 = vmatmul.mubr.bf16.gmra.mxu0 %v3828_v34  ;;  %3567 = vmatmul.mubr.bf16.gmra.mxu1 %v3834_v35  ;;  %v3876_v34 = vld [vmem:[#allocation4 + $0x154] ss:$12 sps:$4 sm:$0xff]   ;;  %v3885_v35 = vld [vmem:[#allocation4 + $0x190] ss:$12 sps:$4 sm:$0xff]  }
  0x6a   :  { %3012 = vmatpush3.bf16.msra.mxu1 %v4190_v14  ;;  %446 = vmatprep.mubr.bf16.mxu0 %v3830_v36  ;;  %v3879_v36 = vld [vmem:[#allocation4 + $0x150] ss:$12 sps:$4 sm:$0xff]  }
  0x6b   :  { %3013 = vmatprep.subr.bf16.mxu1 %v4194_v15  ;;  %3579 = vmatpush3.bf16.msra.mxu0 %v4188_v13 }
  0x6c   :  { %3580 = vmatprep.subr.bf16.mxu0 %v4198_v16  ;;  %696 = vmatprep.mubr.bf16.mxu1 %v3839_v37  ;;  %v3881_v37 = vld [vmem:[#allocation4 + $0x16c] ss:$12 sps:$4 sm:$0xff]  }
  0x6e   :  { %3014 = vmatpush3.bf16.msra.mxu1 %v4200_v17 }
  0x6f   :  { %3015 = vmatprep.subr.bf16.mxu1 %v4204_v18  ;;  %3581 = vmatpush3.bf16.msra.mxu0 %v4198_v16 }
  0x70   :  { %3582 = vmatprep.subr.bf16.mxu0 %v4208_v19 }
  0x71   :  { %447 = vmatmul.mubr.bf16.gmra.mxu0 %v3833_v38  ;;  %v856_v38 = vld [vmem:[#allocation4 + $0x180] sm:$0xff] }
  0x72   :  { %3016 = vmatpush3.bf16.msra.mxu1 %v4210_v20  ;;  %454 = vmatprep.mubr.bf16.mxu0 %v3835_v39  ;;  %v3883_v39 = vld [vmem:[#allocation4 + $0x18c] ss:$12 sps:$4 sm:$0xff]  }
  0x73   :  { %3017 = vmatprep.subr.bf16.mxu1 %v4212_v21  ;;  %3583 = vmatpush3.bf16.msra.mxu0 %v4208_v19 }
  0x74   :  { %3584 = vmatprep.subr.bf16.mxu0 %v4216_v22 }
  0x76   :  { %3018 = vmatpush3.bf16.msra.mxu1 %v4222_v25 }
  0x77   :  { %3585 = vmatpush3.bf16.msra.mxu0 %v4216_v22  ;;  %3598 = vmatprep.subr.bf16.mxu1 %v4150_v1 }
  0x78   :  { %3069 = vmatprep.subr.bf16.mxu0 %v4148_v0 }
  0x79   :  { %455 = vmatmul.mubr.bf16.gmra.mxu0 %v3840_v42  ;;  %697 = vmatmul.mubr.bf16.vlgmr.msra.gmra.mxu1 %v3837_v41  ;;  %v2867_v41 = vcombine.high %v856_v38, %v856_v38  ;;  %v3888_v42 = vld [vmem:[#allocation4 + $0x1a8] ss:$12 sps:$4 sm:$0xff]  }
  0x7a   :  { %462 = vmatprep.mubr.bf16.mxu0 %v2807_v43  ;;  %704 = vmatprep.mubr.bf16.mxu1 %v3842_v44  ;;  %v2866_v43 = vcombine.low %v856_v38, %v856_v38  ;;  %v3891_v44 = vld [vmem:[#allocation4 + $0x1a4] ss:$12 sps:$4 sm:$0xff]  }
  0x7b   :  { %3599 = vmatpush3.bf16.msra.mxu1 %v4150_v1  ;;  %v3941_v38 = vld [vmem:[#allocation4 + $0x2c4] ss:$12 sps:$4 sm:$0xff]  }
  0x7c   :  { %3600 = vmatprep.subr.bf16.mxu1 %v4160_v4 }
  0x7f   :  { %3601 = vmatpush3.bf16.msra.mxu1 %v4160_v4 }
  0x80   :  { %3602 = vmatprep.subr.bf16.mxu1 %v4168_v7 }
  0x81   :  { %463 = vmatmul.mubr.bf16.gmra.mxu0 %v2806_v45  ;;  %705 = vmatmul.mubr.bf16.gmra.mxu1 %v3845_v46  ;;  %v3892_v45 = vld [vmem:[#allocation4 + $0x1c0] ss:$12 sps:$4 sm:$0xff]  }
  0x82   :  { %712 = vmatprep.mubr.bf16.mxu1 %v3846_v47  ;;  %3586 = vmatprep.mubr.bf16.mxu0 %v3848_v48  ;;  %v3894_v46 = vld [vmem:[#allocation4 + $0x194] ss:$12 sps:$4 sm:$0xff]   ;;  %v3895_v47 = vld [vmem:[#allocation4 + $0x1bc] ss:$12 sps:$4 sm:$0xff]   ;;  %v3896_v48 = vld [vmem:[#allocation4 + $0x1ac] ss:$12 sps:$4 sm:$0xff]  }
  0x83   :  { %3603 = vmatpush3.bf16.msra.mxu1 %v4168_v7 }
  0x84   :  { %3604 = vmatprep.subr.bf16.mxu1 %v4178_v10 }
  0x87   :  { %3605 = vmatpush3.bf16.msra.mxu1 %v4178_v10 }
  0x88   :  { %3606 = vmatprep.subr.bf16.mxu1 %v4188_v13 }
  0x89   :  { %713 = vmatmul.mubr.bf16.gmra.mxu1 %v3849_v49  ;;  %3587 = vmatmul.mubr.bf16.vlgmr.msra.gmra.mxu0 %v3850_v50  ;;  %v3897_v49 = vld [vmem:[#allocation4 + $0x1d8] ss:$12 sps:$4 sm:$0xff]  }
  0x8a   :  { %3070 = vmatpush3.bf16.msra.mxu0 %v4153_v2  ;;  %720 = vmatprep.mubr.bf16.mxu1 %v3851_v51  ;;  %v3899_v50 = vld [vmem:[#allocation4 + $0x1c4] ss:$12 sps:$4 sm:$0xff]   ;;  %v3900_v51 = vld [vmem:[#allocation4 + $0x1d4] ss:$12 sps:$4 sm:$0xff]  }
  0x8b   :  { %3071 = vmatprep.subr.bf16.mxu0 %v4156_v3  ;;  %3590 = vmatprep.mubr.bf16.mxu0 %v3853_v52  ;;  %v3901_v52 = vld [vmem:[#allocation4 + $0x1dc] ss:$12 sps:$4 sm:$0xff]  }
  0x8c   :  { %3607 = vmatpush3.bf16.msra.mxu1 %v4188_v13 }
  0x8d   :  { %3608 = vmatprep.subr.bf16.mxu1 %v4198_v16 }
  0x8e   :  { %3072 = vmatpush3.bf16.msra.mxu0 %v4163_v5 }
  0x8f   :  { %3073 = vmatprep.subr.bf16.mxu0 %v4166_v6 }
  0x90   :  { %3609 = vmatpush3.bf16.msra.mxu1 %v4198_v16 }
  0x91   :  { %721 = vmatmul.mubr.bf16.gmra.mxu1 %v3854_v53  ;;  %3591 = vmatmul.mubr.bf16.gmra.mxu0 %v3855_v54  ;;  %v3902_v53 = vld [vmem:[#allocation4 + $0x1f0] ss:$12 sps:$4 sm:$0xff]   ;;  %v3905_v54 = vld [vmem:[#allocation4 + $0x1f4] ss:$12 sps:$4 sm:$0xff]  }
  0x92   :  { %3074 = vmatpush3.bf16.msra.mxu0 %v4172_v8  ;;  %728 = vmatprep.mubr.bf16.mxu1 %v3856_v55  ;;  %v1141_v55 = vld [vmem:[#allocation4 + $0x204] sm:$0xff] }
  0x93   :  { %3075 = vmatprep.subr.bf16.mxu0 %v4176_v9  ;;  %3594 = vmatprep.mubr.bf16.mxu0 %v3859_v56  ;;  %v3904_v56 = vld [vmem:[#allocation4 + $0x1ec] ss:$12 sps:$4 sm:$0xff]  }
  0x94   :  { %3610 = vmatprep.subr.bf16.mxu1 %v4208_v19 }
  0x95   :  { %3611 = vmatpush3.bf16.msra.mxu1 %v4208_v19 }
  0x96   :  { %3076 = vmatpush3.bf16.msra.mxu0 %v4180_v11  ;;  %3612 = vmatprep.subr.bf16.mxu1 %v4216_v22 }
  0x97   :  { %3077 = vmatprep.subr.bf16.mxu0 %v4184_v12 }
  0x99   :  { %729 = vmatmul.mubr.bf16.gmra.mxu1 %v3858_v58  ;;  %3595 = vmatmul.mubr.bf16.gmra.mxu0 %v3860_v59  ;;  %v2885_v58 = vcombine.high %v1141_v55, %v1141_v55  ;;  %v3911_v59 = vld [vmem:[#allocation4 + $0x214] ss:$12 sps:$4 sm:$0xff]  }
  0x9a   :  { %3078 = vmatpush3.bf16.msra.mxu0 %v4190_v14  ;;  %736 = vmatprep.mubr.bf16.mxu1 %v2849_v60  ;;  %v2884_v60 = vcombine.low %v1141_v55, %v1141_v55  ;;  %v3947_v55 = vld [vmem:[#allocation4 + $0x2e4] ss:$12 sps:$4 sm:$0xff]  }
  0x9b   :  { %3079 = vmatprep.subr.bf16.mxu0 %v4194_v15  ;;  %3613 = vmatpush3.bf16.msra.mxu1 %v4216_v22 }
  0x9c   :  { %981 = vmatprep.mubr.bf16.mxu0 %v3865_v61  ;;  %3135 = vmatprep.subr.bf16.mxu1 %v4148_v0  ;;  %v3912_v61 = vld [vmem:[#allocation4 + $0x218] ss:$12 sps:$4 sm:$0xff]  }
  0x9e   :  { %3080 = vmatpush3.bf16.msra.mxu0 %v4200_v17 }
  0x9f   :  { %3081 = vmatprep.subr.bf16.mxu0 %v4204_v18 }
  0xa1   :  { %737 = vmatmul.mubr.bf16.gmra.mxu1 %v2848_v62  ;;  %v3909_v62 = vld [vmem:[#allocation4 + $0x210] ss:$12 sps:$4 sm:$0xff]  }
  0xa2   :  { %3082 = vmatpush3.bf16.msra.mxu0 %v4210_v20  ;;  %3614 = vmatprep.mubr.bf16.mxu1 %v3866_v63  ;;  %v3913_v63 = vld [vmem:[#allocation4 + $0x230] ss:$12 sps:$4 sm:$0xff]  }
  0xa3   :  { %3083 = vmatprep.subr.bf16.mxu0 %v4212_v21 }
  0xa6   :  { %3084 = vmatpush3.bf16.msra.mxu0 %v4222_v25 }
  0xa7   :  { %3626 = vmatprep.subr.bf16.mxu0 %v4150_v1 }
  0xa9   :  { %982 = vmatmul.mubr.bf16.vlgmr.msra.gmra.mxu0 %v3863_v23  ;;  %3615 = vmatmul.mubr.bf16.vlgmr.msra.gmra.mxu1 %v3867_v24  ;;  %v3914_v23 = vld [vmem:[#allocation4 + $0x22c] ss:$12 sps:$4 sm:$0xff]   ;;  %v3979_v24 = vld [vmem:[#allocation7 + $0xb8] sm:$0xff]  }
  0xaa   :  { %3136 = vmatpush3.bf16.msra.mxu1 %v4153_v2  ;;  %3627 = vmatpush3.bf16.msra.mxu0 %v4150_v1 }
  0xab   :  { %3137 = vmatprep.subr.bf16.mxu1 %v4156_v3  ;;  %3628 = vmatprep.subr.bf16.mxu0 %v4160_v4 }
  0xac   :  { %989 = vmatprep.mubr.bf16.mxu0 %v3868_v26  ;;  %3618 = vmatprep.mubr.bf16.mxu1 %v3873_v27  ;;  %v3916_v26 = vld [vmem:[#allocation4 + $0x228] ss:$12 sps:$4 sm:$0xff]   ;;  %v3921_v27 = vld [vmem:[#allocation4 + $0x260] ss:$12 sps:$4 sm:$0xff]  }
  0xae   :  { %3138 = vmatpush3.bf16.msra.mxu1 %v4163_v5  ;;  %3629 = vmatpush3.bf16.msra.mxu0 %v4160_v4 }
  0xaf   :  { %3139 = vmatprep.subr.bf16.mxu1 %v4166_v6  ;;  %3630 = vmatprep.subr.bf16.mxu0 %v4168_v7 }
  0xb1   :  { %990 = vmatmul.mubr.bf16.gmra.mxu0 %v3870_v28  ;;  %3619 = vmatmul.mubr.bf16.gmra.mxu1 %v3875_v29  ;;  %v3940_v28 = vld [vmem:[#allocation4 + $0x29c] ss:$12 sps:$4 sm:$0xff]  }
  0xb2   :  { %3140 = vmatpush3.bf16.msra.mxu1 %v4172_v8  ;;  %3631 = vmatpush3.bf16.msra.mxu0 %v4168_v7 }
  0xb3   :  { %3141 = vmatprep.subr.bf16.mxu1 %v4176_v9  ;;  %997 = vmatprep.mubr.bf16.mxu0 %v3871_v30 }
  0xb4   :  { %3632 = vmatprep.subr.bf16.mxu0 %v4178_v10  ;;  %3622 = vmatprep.mubr.bf16.mxu1 %v3878_v31 }
  0xb6   :  { %3142 = vmatpush3.bf16.msra.mxu1 %v4180_v11  ;;  %3633 = vmatpush3.bf16.msra.mxu0 %v4178_v10 }
  0xb7   :  { %3143 = vmatprep.subr.bf16.mxu1 %v4184_v12  ;;  %3634 = vmatprep.subr.bf16.mxu0 %v4188_v13 }
  0xb9   :  { %998 = vmatmul.mubr.bf16.gmra.mxu0 %v3874_v32  ;;  %3623 = vmatmul.mubr.bf16.gmra.mxu1 %v3880_v33 }
  0xba   :  { %3144 = vmatpush3.bf16.msra.mxu1 %v4190_v14  ;;  %1005 = vmatprep.mubr.bf16.mxu0 %v3876_v34 }
  0xbb   :  { %3145 = vmatprep.subr.bf16.mxu1 %v4194_v15  ;;  %3635 = vmatpush3.bf16.msra.mxu0 %v4188_v13 }
  0xbc   :  { %3636 = vmatprep.subr.bf16.mxu0 %v4198_v16  ;;  %1266 = vmatprep.mubr.bf16.mxu1 %v3885_v35 }
  0xbe   :  { %3146 = vmatpush3.bf16.msra.mxu1 %v4200_v17 }
  0xbf   :  { %3147 = vmatprep.subr.bf16.mxu1 %v4204_v18  ;;  %3637 = vmatpush3.bf16.msra.mxu0 %v4198_v16 }
  0xc0   :  { %3638 = vmatprep.subr.bf16.mxu0 %v4208_v19 }
  0xc1   :  { %1006 = vmatmul.mubr.bf16.gmra.mxu0 %v3879_v36 }
  0xc2   :  { %3148 = vmatpush3.bf16.msra.mxu1 %v4210_v20  ;;  %1013 = vmatprep.mubr.bf16.mxu0 %v3881_v37 }
  0xc3   :  { %3149 = vmatprep.subr.bf16.mxu1 %v4212_v21  ;;  %3639 = vmatpush3.bf16.msra.mxu0 %v4208_v19 }
  0xc4   :  { %3640 = vmatprep.subr.bf16.mxu0 %v4216_v22 }
  0xc6   :  { %3150 = vmatpush3.bf16.msra.mxu1 %v4222_v25 }
  0xc7   :  { %3641 = vmatpush3.bf16.msra.mxu0 %v4216_v22  ;;  %3654 = vmatprep.subr.bf16.mxu1 %v4150_v1 }
  0xc8   :  { %3201 = vmatprep.subr.bf16.mxu0 %v4148_v0 }
  0xc9   :  { %1014 = vmatmul.mubr.bf16.gmra.mxu0 %v3886_v40  ;;  %1267 = vmatmul.mubr.bf16.vlgmr.msra.gmra.mxu1 %v3883_v39  ;;  %v3942_v39 = vld [vmem:[#allocation4 + $0x2b4] ss:$12 sps:$4 sm:$0xff]  }
  0xca   :  { %1021 = vmatprep.mubr.bf16.mxu0 %v2867_v41  ;;  %1274 = vmatprep.mubr.bf16.mxu1 %v3888_v42  ;;  %v3943_v42 = vld [vmem:[#allocation4 + $0x2e0] ss:$12 sps:$4 sm:$0xff]  }
  0xcb   :  { %3655 = vmatpush3.bf16.msra.mxu1 %v4150_v1 }
  0xcc   :  { %3656 = vmatprep.subr.bf16.mxu1 %v4160_v4 }
  0xcf   :  { %3657 = vmatpush3.bf16.msra.mxu1 %v4160_v4 }
  0xd0   :  { %3658 = vmatprep.subr.bf16.mxu1 %v4168_v7 }
  0xd1   :  { %1022 = vmatmul.mubr.bf16.gmra.mxu0 %v2866_v43  ;;  %1275 = vmatmul.mubr.bf16.gmra.mxu1 %v3891_v44  ;;  %v3945_v43 = vld [vmem:[#allocation4 + $0x2cc] ss:$12 sps:$4 sm:$0xff]  }
  0xd2   :  { %1282 = vmatprep.mubr.bf16.mxu1 %v3892_v45  ;;  %3642 = vmatprep.mubr.bf16.mxu0 %v3894_v46 }
  0xd3   :  { %3659 = vmatpush3.bf16.msra.mxu1 %v4168_v7 }
  0xd4   :  { %3660 = vmatprep.subr.bf16.mxu1 %v4178_v10 }
  0xd7   :  { %3661 = vmatpush3.bf16.msra.mxu1 %v4178_v10 }
  0xd8   :  { %3662 = vmatprep.subr.bf16.mxu1 %v4188_v13 }
  0xd9   :  { %1283 = vmatmul.mubr.bf16.gmra.mxu1 %v3895_v47  ;;  %3643 = vmatmul.mubr.bf16.vlgmr.msra.gmra.mxu0 %v3896_v48 }
  0xda   :  { %3202 = vmatpush3.bf16.msra.mxu0 %v4153_v2  ;;  %1290 = vmatprep.mubr.bf16.mxu1 %v3897_v49 }
  0xdb   :  { %3203 = vmatprep.subr.bf16.mxu0 %v4156_v3  ;;  %3646 = vmatprep.mubr.bf16.mxu0 %v3899_v50 }
  0xdc   :  { %3663 = vmatpush3.bf16.msra.mxu1 %v4188_v13 }
  0xdd   :  { %3664 = vmatprep.subr.bf16.mxu1 %v4198_v16 }
  0xde   :  { %3204 = vmatpush3.bf16.msra.mxu0 %v4163_v5 }
  0xdf   :  { %3205 = vmatprep.subr.bf16.mxu0 %v4166_v6 }
  0xe0   :  { %3665 = vmatpush3.bf16.msra.mxu1 %v4198_v16 }
  0xe1   :  { %1291 = vmatmul.mubr.bf16.gmra.mxu1 %v3900_v51  ;;  %3647 = vmatmul.mubr.bf16.gmra.mxu0 %v3901_v52 }
  0xe2   :  { %3206 = vmatpush3.bf16.msra.mxu0 %v4172_v8  ;;  %1298 = vmatprep.mubr.bf16.mxu1 %v3902_v53 }
  0xe3   :  { %3207 = vmatprep.subr.bf16.mxu0 %v4176_v9  ;;  %3650 = vmatprep.mubr.bf16.mxu0 %v3905_v54  ;;  %v3946_v54 = vld [vmem:[#allocation4 + $0x2dc] ss:$12 sps:$4 sm:$0xff]  }
  0xe4   :  { %3666 = vmatprep.subr.bf16.mxu1 %v4208_v19 }
  0xe5   :  { %3667 = vmatpush3.bf16.msra.mxu1 %v4208_v19 }
  0xe6   :  { %3208 = vmatpush3.bf16.msra.mxu0 %v4180_v11  ;;  %3668 = vmatprep.subr.bf16.mxu1 %v4216_v22 }
  0xe7   :  { %3209 = vmatprep.subr.bf16.mxu0 %v4184_v12 }
  0xe9   :  { %1299 = vmatmul.mubr.bf16.gmra.mxu1 %v3904_v56  ;;  %3651 = vmatmul.mubr.bf16.gmra.mxu0 %v3906_v57 }
  0xea   :  { %3210 = vmatpush3.bf16.msra.mxu0 %v4190_v14  ;;  %1306 = vmatprep.mubr.bf16.mxu1 %v2885_v58  ;;  %v3948_v58 = vld [vmem:[#allocation4 + $0x2f8] ss:$12 sps:$4 sm:$0xff]  }
  0xeb   :  { %3211 = vmatprep.subr.bf16.mxu0 %v4194_v15  ;;  %3669 = vmatpush3.bf16.msra.mxu1 %v4216_v22 }
  0xec   :  { %1551 = vmatprep.mubr.bf16.mxu0 %v3911_v59  ;;  %3267 = vmatprep.subr.bf16.mxu1 %v4148_v0  ;;  %v3919_v0 = vld [vmem:[#allocation4 + $0x248] ss:$12 sps:$4 sm:$0xff]  }
  0xed   :  { %v3951_v59 = vld [vmem:[#allocation4 + $0x2fc] ss:$12 sps:$4 sm:$0xff]  }
  0xee   :  { %3212 = vmatpush3.bf16.msra.mxu0 %v4200_v17 }
  0xef   :  { %3213 = vmatprep.subr.bf16.mxu0 %v4204_v18 }
  0xf1   :  { %1307 = vmatmul.mubr.bf16.gmra.mxu1 %v2884_v60 }
  0xf2   :  { %3214 = vmatpush3.bf16.msra.mxu0 %v4210_v20  ;;  %3670 = vmatprep.mubr.bf16.mxu1 %v3912_v61 }
  0xf3   :  { %3215 = vmatprep.subr.bf16.mxu0 %v4212_v21 }
  0xf6   :  { %3216 = vmatpush3.bf16.msra.mxu0 %v4222_v25 }
  0xf7   :  { %3682 = vmatprep.subr.bf16.mxu0 %v4150_v1  ;;  %v3917_v1 = vld [vmem:[#allocation4 + $0x244] ss:$12 sps:$4 sm:$0xff]  }
  0xf9   :  { %1552 = vmatmul.mubr.bf16.vlgmr.msra.gmra.mxu0 %v3909_v62  ;;  %3671 = vmatmul.mubr.bf16.vlgmr.msra.gmra.mxu1 %v3913_v63 }
  0xfa   :  { %3268 = vmatpush3.bf16.msra.mxu1 %v4153_v2  ;;  %3683 = vmatpush3.bf16.msra.mxu0 %v3979_v24  ;;  %v3924_v2 = vld [vmem:[#allocation4 + $0x278] ss:$12 sps:$4 sm:$0xff]  }
  0xfb   :  { %3269 = vmatprep.subr.bf16.mxu1 %v4156_v3  ;;  %3684 = vmatprep.subr.bf16.mxu0 %v4160_v4  ;;  %v3920_v3 = vld [vmem:[#allocation4 + $0x240] ss:$12 sps:$4 sm:$0xff]  }
  0xfc   :  { %1559 = vmatprep.mubr.bf16.mxu0 %v3914_v23  ;;  %3674 = vmatprep.mubr.bf16.mxu1 %v3919_v0  ;;  %v1711_v0 = vld [vmem:[#allocation4 + $0x30c] sm:$0xff] }
  0xfe   :  { %3270 = vmatpush3.bf16.msra.mxu1 %v4163_v5  ;;  %3685 = vmatpush3.bf16.msra.mxu0 %v4160_v4  ;;  %v3926_v4 = vld [vmem:[#allocation4 + $0x290] ss:$0 sps:$4 sm:$0xff]   ;;  %v3922_v5 = vld [vmem:[#allocation4 + $0x25c] ss:$12 sps:$4 sm:$0xff]  }
  0xff   :  { %3271 = vmatprep.subr.bf16.mxu1 %v4166_v6  ;;  %3686 = vmatprep.subr.bf16.mxu0 %v4168_v7  ;;  %v3931_v6 = vld [vmem:[#allocation4 + $0x298] ss:$12 sps:$4 sm:$0xff]  }
 0x101   :  { %1560 = vmatmul.mubr.bf16.gmra.mxu0 %v3916_v26  ;;  %3675 = vmatmul.mubr.bf16.gmra.mxu1 %v3921_v27 }
 0x102   :  { %3272 = vmatpush3.bf16.msra.mxu1 %v4172_v8  ;;  %3687 = vmatpush3.bf16.msra.mxu0 %v4168_v7  ;;  %v3925_v7 = vld [vmem:[#allocation4 + $0x258] ss:$12 sps:$4 sm:$0xff]   ;;  %v3927_v8 = vld [vmem:[#allocation4 + $0x274] ss:$12 sps:$4 sm:$0xff]  }
 0x103   :  { %3273 = vmatprep.subr.bf16.mxu1 %v4176_v9  ;;  %1567 = vmatprep.mubr.bf16.mxu0 %v3917_v1  ;;  %v1426_v9 = vld [vmem:[#allocation4 + $0x288] sm:$0xff]  ;;  %v3950_v1 = vld [vmem:[#allocation4 + $0x2f4] ss:$12 sps:$4 sm:$0xff]  }
 0x104   :  { %3688 = vmatprep.subr.bf16.mxu0 %v4178_v10  ;;  %3678 = vmatprep.mubr.bf16.mxu1 %v3924_v2  ;;  %v3952_v2 = vld [vmem:[#allocation4 + $0x314] ss:$0 sps:$4 sm:$0xff]  }
 0x106   :  { %3274 = vmatpush3.bf16.msra.mxu1 %v4180_v11  ;;  %3689 = vmatpush3.bf16.msra.mxu0 %v4178_v10  ;;  %v3929_v10 = vld [vmem:[#allocation4 + $0x294] ss:$12 sps:$4 sm:$0xff]   ;;  %v3932_v11 = vld [vmem:[#allocation4 + $0x270] ss:$12 sps:$4 sm:$0xff]  }
 0x107   :  { %3275 = vmatprep.subr.bf16.mxu1 %v4184_v12  ;;  %3690 = vmatprep.subr.bf16.mxu0 %v4188_v13  ;;  %v2903_v12 = vcombine.high %v1426_v9, %v1426_v9 }
 0x109   :  { %1568 = vmatmul.mubr.bf16.gmra.mxu0 %v3920_v3  ;;  %3679 = vmatmul.mubr.bf16.gmra.mxu1 %v3926_v4  ;;  %v2921_v4 = vcombine.high %v1711_v0, %v1711_v0 }
 0x10a   :  { %3276 = vmatpush3.bf16.msra.mxu1 %v4190_v14  ;;  %1575 = vmatprep.mubr.bf16.mxu0 %v3922_v5 }
 0x10b   :  { %3277 = vmatprep.subr.bf16.mxu1 %v4194_v15  ;;  %3691 = vmatpush3.bf16.msra.mxu0 %v4188_v13  ;;  %v3934_v13 = vld [vmem:[#allocation4 + $0x2b0] ss:$12 sps:$4 sm:$0xff]  }
 0x10c   :  { %3692 = vmatprep.subr.bf16.mxu0 %v4198_v16  ;;  %1836 = vmatprep.mubr.bf16.mxu1 %v3931_v6 }
 0x10e   :  { %3278 = vmatpush3.bf16.msra.mxu1 %v4200_v17 }
 0x10f   :  { %3279 = vmatprep.subr.bf16.mxu1 %v4204_v18  ;;  %3693 = vmatpush3.bf16.msra.mxu0 %v4198_v16 }
 0x110   :  { %3694 = vmatprep.subr.bf16.mxu0 %v4208_v19 }
 0x111   :  { %1576 = vmatmul.mubr.bf16.gmra.mxu0 %v3925_v7 }
 0x112   :  { %3280 = vmatpush3.bf16.msra.mxu1 %v4210_v20  ;;  %1583 = vmatprep.mubr.bf16.mxu0 %v3927_v8  ;;  %v2902_v20 = vcombine.low %v1426_v9, %v1426_v9 }
 0x113   :  { %3281 = vmatprep.subr.bf16.mxu1 %v4212_v21  ;;  %3695 = vmatpush3.bf16.msra.mxu0 %v4208_v19  ;;  %v3937_v21 = vld [vmem:[#allocation4 + $0x2ac] ss:$12 sps:$4 sm:$0xff]  }
 0x114   :  { %3696 = vmatprep.subr.bf16.mxu0 %v4216_v22 }
 0x116   :  { %3282 = vmatpush3.bf16.msra.mxu1 %v4222_v25  ;;  %v3938_v25 = vld [vmem:[#allocation4 + $0x2c8] ss:$12 sps:$4 sm:$0xff]  }
 0x117   :  { %3697 = vmatpush3.bf16.msra.mxu0 %v4216_v22 }
 0x119   :  { %1584 = vmatmul.mubr.bf16.gmra.mxu0 %v3932_v11  ;;  %1837 = vmatmul.mubr.bf16.vlgmr.msra.gmra.mxu1 %v3929_v10  ;;  %v4387_v14 = vpop.f32.mrf.mxu0  ;;  %v3560_v15 = vpop.f32.mrf.mxu1 }
 0x11a   :  { %1591 = vmatprep.mubr.bf16.mxu0 %v2903_v12  ;;  %1844 = vmatprep.mubr.bf16.mxu1 %v3934_v13 }
 0x11b   :  { %v4389_v16 = vpop.f32.mrf.mxu0  ;;  %v4391_v17 = vpop.f32.mrf.mxu1 }
 0x11d   :  { %v2956_v18 = vpop.f32.mrf.mxu0  ;;  %v3561_v19 = vpop.f32.mrf.mxu1 }
 0x11f   :  { %v2957_v29 = vpop.f32.mrf.mxu0  ;;  %v507_v30 = vpop.f32.mrf.mxu1 }
 0x120   :  { %v2958_v22 = vadd.f32 %v2957_v29, %v2956_v18 }
 0x121   :  { %1592 = vmatmul.mubr.bf16.gmra.mxu0 %v2902_v20  ;;  %1845 = vmatmul.mubr.bf16.gmra.mxu1 %v3937_v21  ;;  %v2959_v31 = vpop.f32.mrf.mxu0  ;;  %v3564_v32 = vpop.f32.mrf.mxu1 }
 0x122   :  { %v4393_v33 = vadd.f32 %v2958_v22, %v507_v30  ;;  %1852 = vmatprep.mubr.bf16.mxu1 %v3938_v25  ;;  %3698 = vmatprep.mubr.bf16.mxu0 %v3940_v28 }
 0x123   :  { %v2960_v34 = vpop.f32.mrf.mxu0  ;;  %v520_v35 = vpop.f32.mrf.mxu1 }
 0x124   :  { %v2961_v36 = vadd.f32 %v2960_v34, %v2959_v31 }
 0x125   :  { %v2962_v37 = vpop.f32.mrf.mxu0  ;;  %v3565_v40 = vpop.f32.mrf.mxu1 }
 0x126   :  { %v4395_v41 = vadd.f32 %v3560_v15, %v2961_v36 }
 0x127   :  { %v2963_v44 = vpop.f32.mrf.mxu0  ;;  %v523_v45 = vpop.f32.mrf.mxu1 }
 0x128   :  { %v2964_v46 = vadd.f32 %v2963_v44, %v2962_v37 }
 0x129   :  { %1853 = vmatmul.mubr.bf16.gmra.mxu1 %v3941_v38  ;;  %3699 = vmatmul.mubr.bf16.vlgmr.msra.gmra.mxu0 %v3942_v39  ;;  %v2965_v47 = vpop.f32.mrf.mxu0  ;;  %v3568_v48 = vpop.f32.mrf.mxu1 }
 0x12a   :  { %v4397_v49 = vadd.f32 %v3561_v19, %v2964_v46  ;;  %1860 = vmatprep.mubr.bf16.mxu1 %v3943_v42  ;;  %3702 = vmatprep.mubr.bf16.mxu0 %v3945_v43  ;;  %v2920_v19 = vcombine.low %v1711_v0, %v1711_v0  ;;  %v2955_v43 = vadd.f32 %v4389_v16, %v4387_v14 }
 0x12b   :  { %v2966_v50 = vpop.f32.mrf.mxu0  ;;  %v536_v51 = vpop.f32.mrf.mxu1 }
 0x12c   :  { %v2967_v52 = vadd.f32 %v2966_v50, %v2965_v47 }
 0x12d   :  { %v2968_v53 = vpop.f32.mrf.mxu0  ;;  %v3569_v56 = vpop.f32.mrf.mxu1 }
 0x12e   :  { %v4399_v57 = vadd.f32 %v2967_v52, %v520_v35  ;;  %v4418_v52 = vadd.f32 %v2955_v43, %v4391_v17  ;;  %v2111_v43 = vld [vmem:[#allocation9 + $0x178] sm:$0xff] }
 0x12f   :  { %v2969_v60 = vpop.f32.mrf.mxu0  ;;  %v539_v27 = vpop.f32.mrf.mxu1 }
 0x130   :  { %v2970_v61 = vadd.f32 %v2969_v60, %v2968_v53 }
 0x131   :  { %1861 = vmatmul.mubr.bf16.gmra.mxu1 %v3946_v54  ;;  %3703 = vmatmul.mubr.bf16.gmra.mxu0 %v3947_v55  ;;  %v2971_v62 = vpop.f32.mrf.mxu0 }
 0x132   :  { %v4401_v63 = vadd.f32 %v2970_v61, %v523_v45  ;;  %1868 = vmatprep.mubr.bf16.mxu1 %v3948_v58  ;;  %3706 = vmatprep.mubr.bf16.mxu0 %v3951_v59 }
 0x133   :  { %v2972_v23 = vpop.f32.mrf.mxu0 }
 0x134   :  { %v2973_v24 = vadd.f32 %v2972_v23, %v2971_v62 }
 0x135   :  { %v2974_v26 = vpop.f32.mrf.mxu0 }
 0x136   :  { %v4403_v3 = vadd.f32 %v3564_v32, %v2973_v24 }
 0x137   :  { %v2975_v5 = vpop.f32.mrf.mxu0 }
 0x138   :  { %v2976_v6 = vadd.f32 %v2975_v5, %v2974_v26 }
 0x139   :  { %1869 = vmatmul.mubr.bf16.gmra.mxu1 %v3950_v1  ;;  %v2977_v7 = vpop.f32.mrf.mxu0  ;;  %v3019_v8 = vpop.f32.mrf.mxu1  ;;  %3707 = vmatmul.mubr.bf16.gmra.mxu0 %v3952_v2 }
 0x13a   :  { %v4405_v9 = vadd.f32 %v3565_v40, %v2976_v6  ;;  %1876 = vmatprep.mubr.bf16.mxu1 %v2921_v4 }
 0x13b   :  { %v2978_v10 = vpop.f32.mrf.mxu0  ;;  %v3020_v11 = vpop.f32.mrf.mxu1 }
 0x13c   :  { %v2979_v12 = vadd.f32 %v2978_v10, %v2977_v7  ;;  %v3021_v13 = vadd.f32 %v3020_v11, %v3019_v8 }
 0x13d   :  { %v2980_v15 = vpop.f32.mrf.mxu0  ;;  %v3022_v18 = vpop.f32.mrf.mxu1 }
 0x13e   :  { %v4407_v20 = vadd.f32 %v2979_v12, %v536_v51 }
 0x13f   :  { %v2981_v21 = vpop.f32.mrf.mxu0  ;;  %v3023_v25 = vpop.f32.mrf.mxu1 }
 0x140   :  { %v2982_v28 = vadd.f32 %v2981_v21, %v2980_v15  ;;  %v3024_v29 = vadd.f32 %v3023_v25, %v3022_v18 }
 0x141   :  { %1877 = vmatmul.mubr.bf16.gmra.mxu1 %v2920_v19  ;;  %v2983_v30 = vpop.f32.mrf.mxu0  ;;  %v3025_v22 = vpop.f32.mrf.mxu1 }
 0x142   :  { %v4409_v31 = vadd.f32 %v2982_v28, %v539_v27 }
 0x143   :  { %v2984_v32 = vpop.f32.mrf.mxu0  ;;  %v3026_v34 = vpop.f32.mrf.mxu1 }
 0x144   :  { %v2985_v35 = vadd.f32 %v2984_v32, %v2983_v30  ;;  %v3027_v36 = vadd.f32 %v3026_v34, %v3025_v22 }
 0x145   :  { %v2986_v37 = vpop.f32.mrf.mxu0  ;;  %v3028_v38 = vpop.f32.mrf.mxu1 }
 0x146   :  { %v4411_v39 = vadd.f32 %v3568_v48, %v2985_v35 }
 0x147   :  { %v2987_v40 = vpop.f32.mrf.mxu0  ;;  %v3029_v42 = vpop.f32.mrf.mxu1 }
 0x148   :  { %v3030_v44 = vadd.f32 %v3029_v42, %v3028_v38  ;;  %v2127_v42 = vld [vmem:[#allocation9 + $0x1f8] sm:$0xff] }
 0x149   :  { %v3031_v45 = vpop.f32.mrf.mxu1  ;;  %v3588_v46 = vpop.f32.mrf.mxu0  ;;  %3368 = vmatprep.subr.mxu1 %v2127_v42 }
 0x14a   :  { %v4415_v47 = vadd.f32 %v3588_v46, %v3027_v36  ;;  %3369 = vmatpush3.msra.mxu1 %v2111_v43 }
 0x14b   :  { %v3032_v50 = vpop.f32.mrf.mxu1  ;;  %v778_v51 = vpop.f32.mrf.mxu0 }
 0x14c   :  { %v826_v53 = vmax.f32 %v4395_v41, %v4415_v47  ;;  %v3033_v48 = vadd.f32 %v3032_v50, %v3031_v45  ;;  %v4422_v54 = vadd.f32 %v3021_v13, %v778_v51 }
 0x14d   :  { %v3034_v55 = vpop.f32.mrf.mxu1  ;;  %v3589_v56 = vpop.f32.mrf.mxu0 }
 0x14e   :  { %v824_v14 = vmax.f32 %v4418_v52, %v4422_v54  ;;  %v4426_v16 = vadd.f32 %v3589_v56, %v3030_v44  ;;  %v2126_v56 = vld [vmem:[#allocation9 + $0x1f0] sm:$0xff]  ;;  %v2121_v52 = vld [vmem:[#allocation9 + $0x1c8] sm:$0xff] }
 0x14f   :  { %v3035_v58 = vpop.f32.mrf.mxu1  ;;  %v781_v59 = vpop.f32.mrf.mxu0  ;;  %3370 = vmatprep.subr.mxu1 %v2126_v56  ;;  %v2091_v56 = vld [vmem:[#allocation9 + $0xd8] sm:$0xff]  ;;  %v2090_v54 = vld [vmem:[#allocation9 + $0xd0] sm:$0xff] }
 0x150   :  { %v827_v60 = vmax.f32 %v4397_v49, %v4426_v16  ;;  %v3036_v17 = vadd.f32 %v3035_v58, %v3034_v55  ;;  %v4430_v61 = vadd.f32 %v3024_v29, %v781_v59  ;;  %v2110_v58 = vld [vmem:[#allocation9 + $0x170] sm:$0xff]  ;;  %v2125_v59 = vld [vmem:[#allocation9 + $0x1e8] sm:$0xff]  ;;  %v2084_v49 = vld [vmem:[#allocation9 + $0xa0] sm:$0xff] }
 0x151   :  { %v3037_v62 = vpop.f32.mrf.mxu1  ;;  %v3592_v23 = vpop.f32.mrf.mxu0  ;;  %3371 = vmatpush3.msra.mxu1 %v2110_v58  ;;  %v2115_v16 = vld [vmem:[#allocation9 + $0x198] sm:$0xff] }
 0x152   :  { %v825_v0 = vmax.f32 %v4393_v33, %v4430_v61  ;;  %3372 = vmatprep.subr.mxu1 %v2125_v59  ;;  %v2106_v59 = vld [vmem:[#allocation9 + $0x150] sm:$0xff]  ;;  %v2104_v33 = vld [vmem:[#allocation9 + $0x140] sm:$0xff] }
 0x153   :  { %v3038_v24 = vpop.f32.mrf.mxu1  ;;  %v794_v26 = vpop.f32.mrf.mxu0 }
 0x154   :  { %v3039_v27 = vadd.f32 %v3038_v24, %v3037_v62  ;;  %v4434_v1 = vadd.f32 %v3033_v48, %v794_v26  ;;  %v2095_v24 = vld [vmem:[#allocation9 + $0xf8] sm:$0xff] }
 0x155   :  { %v3040_v2 = vpop.f32.mrf.mxu1  ;;  %v3593_v4 = vpop.f32.mrf.mxu0  ;;  %v2079_v26 = vld [vmem:[#allocation9 + $0x78] sm:$0xff]  ;;  %3333 = vmatprep.subr.mxu0 %v2095_v24 }
 0x156   :  { %v4436_v5 = vadd.f32 %v3592_v23, %v3039_v27  ;;  %v828_v6 = vmax.f32 %v4399_v57, %v4434_v1  ;;  %v2109_v23 = vld [vmem:[#allocation9 + $0x168] sm:$0xff]  ;;  %v2094_v27 = vld [vmem:[#allocation9 + $0xf0] sm:$0xff]  ;;  %3334 = vmatpush3.msra.mxu0 %v2079_v26 }
 0x157   :  { %v3041_v7 = vpop.f32.mrf.mxu1  ;;  %v797_v8 = vpop.f32.mrf.mxu0  ;;  %3373 = vmatpush3.msra.mxu1 %v2109_v23  ;;  %3335 = vmatprep.subr.mxu0 %v2094_v27  ;;  %v2105_v27 = vld [vmem:[#allocation9 + $0x148] sm:$0xff]  ;;  %v2082_v57 = vld [vmem:[#allocation9 + $0x90] sm:$0xff] }
 0x158   :  { %v830_v10 = vmax.f32 %v4403_v3, %v4436_v5  ;;  %v3042_v11 = vadd.f32 %v3041_v7, %v3040_v2  ;;  %v4442_v12 = vadd.f32 %v3036_v17, %v797_v8  ;;  %v2078_v7 = vld [vmem:[#allocation9 + $0x70] sm:$0xff]  ;;  %v2113_v1 = vld [vmem:[#allocation9 + $0x188] sm:$0xff] }
 0x159   :  { %v3043_v13 = vpop.f32.mrf.mxu1  ;;  %v3596_v15 = vpop.f32.mrf.mxu0  ;;  %3336 = vmatpush3.msra.mxu0 %v2078_v7 }
 0x15a   :  { %v4444_v18 = vadd.f32 %v3593_v4, %v3042_v11  ;;  %v829_v19 = vmax.f32 %v4401_v63, %v4442_v12  ;;  %v2124_v11 = vld [vmem:[#allocation9 + $0x1e0] sm:$0xff] }
 0x15b   :  { %v3044_v21 = vpop.f32.mrf.mxu1  ;;  %v810_v25 = vpop.f32.mrf.mxu0  ;;  %3374 = vmatprep.subr.mxu1 %v2124_v11  ;;  %v2120_v11 = vld [vmem:[#allocation9 + $0x1c0] sm:$0xff] }
 0x15c   :  { %v831_v28 = vmax.f32 %v4405_v9, %v4444_v18  ;;  %v3045_v29 = vadd.f32 %v3044_v21, %v3043_v13  ;;  %v2093_v13 = vld [vmem:[#allocation9 + $0xe8] sm:$0xff]  ;;  %v2080_v12 = vld [vmem:[#allocation9 + $0x80] sm:$0xff] }
 0x15d   :  { %v3046_v30 = vpop.f32.mrf.mxu1  ;;  %v3597_v22 = vpop.f32.mrf.mxu0  ;;  %3337 = vmatprep.subr.mxu0 %v2093_v13 }
 0x15e   :  { %v4450_v32 = vadd.f32 %v3045_v29, %v810_v25  ;;  %v2108_v25 = vld [vmem:[#allocation9 + $0x160] sm:$0xff]  ;;  %v2077_v29 = vld [vmem:[#allocation9 + $0x68] sm:$0xff]  ;;  %v2123_v22 = vld [vmem:[#allocation9 + $0x1d8] sm:$0xff] }
 0x15f   :  { %v3047_v34 = vpop.f32.mrf.mxu1  ;;  %v813_v35 = vpop.f32.mrf.mxu0  ;;  %3375 = vmatpush3.msra.mxu1 %v2108_v25  ;;  %3338 = vmatpush3.msra.mxu0 %v2077_v29  ;;  %v2088_v25 = vld [vmem:[#allocation9 + $0xc0] sm:$0xff]  ;;  %v2119_v29 = vld [vmem:[#allocation9 + $0x1b8] sm:$0xff] }
 0x160   :  { %v832_v36 = vmax.f32 %v4407_v20, %v4450_v32  ;;  %v3048_v37 = vadd.f32 %v3047_v34, %v3046_v30  ;;  %3376 = vmatprep.subr.mxu1 %v2123_v22 }
 0x161   :  { %v3049_v38 = vpop.f32.mrf.mxu1 }
 0x162   :  { %v4454_v40 = vadd.f32 %v3048_v37, %v813_v35  ;;  %v2107_v37 = vld [vmem:[#allocation9 + $0x158] sm:$0xff] }
 0x163   :  { %v3050_v44 = vpop.f32.mrf.mxu1  ;;  %3377 = vmatpush3.msra.mxu1 %v2107_v37 }
 0x164   :  { %v833_v45 = vmax.f32 %v4409_v31, %v4454_v40  ;;  %v3051_v46 = vadd.f32 %v3050_v44, %v3049_v38  ;;  %v2092_v38 = vld [vmem:[#allocation9 + $0xe0] sm:$0xff] }
 0x165   :  { %v3052_v50 = vpop.f32.mrf.mxu1  ;;  %3339 = vmatprep.subr.mxu0 %v2092_v38  ;;  %v2076_v44 = vld [vmem:[#allocation9 + $0x60] sm:$0xff]  ;;  %v2087_v38 = vld [vmem:[#allocation9 + $0xb8] sm:$0xff] }
 0x166   :  { %v4458_v51 = vadd.f32 %v3596_v15, %v3051_v46  ;;  %3340 = vmatpush3.msra.mxu0 %v2076_v44 }
 0x167   :  { %v3053_v48 = vpop.f32.mrf.mxu1  ;;  %3341 = vmatprep.subr.mxu0 %v2091_v56  ;;  %v2117_v56 = vld [vmem:[#allocation9 + $0x1a8] sm:$0xff] }
 0x168   :  { %v834_v55 = vmax.f32 %v4411_v39, %v4458_v51  ;;  %v2122_v48 = vld [vmem:[#allocation9 + $0x1d0] sm:$0xff] }
 0x169   :  { %v3085_v17 = vpop.f32.mrf.mxu0  ;;  %v4462_v62 = vpop.f32.mrf.mxu1  ;;  %3378 = vmatprep.subr.mxu1 %v2122_v48  ;;  %v2102_v48 = vld [vmem:[#allocation9 + $0x130] sm:$0xff] }
 0x16a   :  { %3379 = vmatpush3.msra.mxu1 %v2106_v59 }
 0x16b   :  { %v3086_v2 = vpop.f32.mrf.mxu0  ;;  %v1063_v4 = vpop.f32.mrf.mxu1  ;;  %3380 = vmatprep.subr.mxu1 %v2121_v52 }
 0x16c   :  { %v3087_v8 = vadd.f32 %v3086_v2, %v3085_v17  ;;  %v2075_v17 = vld [vmem:[#allocation9 + $0x58] sm:$0xff]  ;;  %v2074_v2 = vld [vmem:[#allocation9 + $0x50] sm:$0xff]  ;;  %3381 = vmatpush3.msra.mxu1 %v2105_v27 }
 0x16d   :  { %v3088_v15 = vpop.f32.mrf.mxu0  ;;  %v4464_v21 = vpop.f32.mrf.mxu1  ;;  %3342 = vmatpush3.msra.mxu0 %v2075_v17  ;;  %3382 = vmatprep.subr.mxu1 %v2120_v11  ;;  %v2101_v17 = vld [vmem:[#allocation9 + $0x128] sm:$0xff] }
 0x16e   :  { %v1064_v30 = vadd.f32 %v3087_v8, %v1063_v4  ;;  %3343 = vmatprep.subr.mxu0 %v2090_v54  ;;  %v2089_v8 = vld [vmem:[#allocation9 + $0xc8] sm:$0xff]  ;;  %3383 = vmatpush3.msra.mxu1 %v2104_v33  ;;  %v2083_v33 = vld [vmem:[#allocation9 + $0x98] sm:$0xff] }
 0x16f   :  { %v3089_v34 = vpop.f32.mrf.mxu0  ;;  %v1066_v35 = vpop.f32.mrf.mxu1  ;;  %3344 = vmatpush3.msra.mxu0 %v2074_v2  ;;  %3384 = vmatprep.subr.mxu1 %v2119_v29  ;;  %v2085_v54 = vld [vmem:[#allocation9 + $0xa8] sm:$0xff]  ;;  %v2067_v29 = vld [vmem:[#allocation9 + $0x18] sm:$0xff] }
 0x170   :  { %v4469_v42 = vmax.f32 %v824_v14, %v1064_v30  ;;  %v3090_v43 = vadd.f32 %v3089_v34, %v3088_v15  ;;  %3345 = vmatprep.subr.mxu0 %v2089_v8  ;;  %v2073_v15 = vld [vmem:[#allocation9 + $0x48] sm:$0xff]  ;;  %v2072_v34 = vld [vmem:[#allocation9 + $0x40] sm:$0xff] }
 0x171   :  { %v3091_v46 = vpop.f32.mrf.mxu0  ;;  %v4471_v50 = vpop.f32.mrf.mxu1  ;;  %3346 = vmatpush3.msra.mxu0 %v2073_v15  ;;  %v2069_v2 = vld [vmem:[#allocation9 + $0x28] sm:$0xff]  ;;  %v2099_v15 = vld [vmem:[#allocation9 + $0x118] sm:$0xff] }
 0x172   :  { %v1067_v58 = vadd.f32 %v3090_v43, %v1066_v35  ;;  %3347 = vmatprep.subr.mxu0 %v2088_v25  ;;  %v2118_v43 = vld [vmem:[#allocation9 + $0x1b0] sm:$0xff] }
 0x173   :  { %v3092_v23 = vpop.f32.mrf.mxu0  ;;  %v4473_v24 = vpop.f32.mrf.mxu1  ;;  %3348 = vmatpush3.msra.mxu0 %v2072_v34 }
 0x174   :  { %v4478_v14 = vmax.f32 %v825_v0, %v1067_v58  ;;  %v3093_v26 = vadd.f32 %v3092_v23, %v3091_v46  ;;  %3349 = vmatprep.subr.mxu0 %v2087_v38  ;;  %v2071_v46 = vld [vmem:[#allocation9 + $0x38] sm:$0xff]  ;;  %v2097_v38 = vld [vmem:[#allocation9 + $0x108] sm:$0xff] }
 0x175   :  { %v3094_v4 = vpop.f32.mrf.mxu0  ;;  %v4480_v7 = vpop.f32.mrf.mxu1  ;;  %3350 = vmatpush3.msra.mxu0 %v2071_v46  ;;  %v2112_v46 = vld [vmem:[#allocation9 + $0x180] sm:$0xff] }
 0x176   :  { %v1072_v13 = vadd.f32 %v4462_v62, %v3093_v26  ;;  %v2103_v62 = vld [vmem:[#allocation9 + $0x138] sm:$0xff]  ;;  %v2116_v26 = vld [vmem:[#allocation9 + $0x1a0] sm:$0xff] }
 0x177   :  { %v3095_v61 = vpop.f32.mrf.mxu0  ;;  %v1082_v0 = vpop.f32.mrf.mxu1  ;;  %3385 = vmatpush3.msra.mxu1 %v2103_v62 }
 0x178   :  { %v3096_v30 = vadd.f32 %v3095_v61, %v3094_v4  ;;  %v4486_v22 = vmax.f32 %v826_v53, %v1072_v13  ;;  %3386 = vmatprep.subr.mxu1 %v2118_v43  ;;  %v2086_v53 = vld [vmem:[#allocation9 + $0xb0] sm:$0xff]  ;;  %v2100_v4 = vld [vmem:[#allocation9 + $0x120] sm:$0xff] }
 0x179   :  { %v3097_v35 = vpop.f32.mrf.mxu0  ;;  %v4488_v37 = vpop.f32.mrf.mxu1  ;;  %3387 = vmatpush3.msra.mxu1 %v2102_v48  ;;  %3351 = vmatprep.subr.mxu0 %v2086_v53  ;;  %v2068_v13 = vld [vmem:[#allocation9 + $0x20] sm:$0xff]  ;;  %v2114_v61 = vld [vmem:[#allocation9 + $0x190] sm:$0xff] }
 0x17a   :  { %v1075_v44 = vadd.f32 %v4464_v21, %v3096_v30  ;;  %3388 = vmatprep.subr.mxu1 %v2117_v56  ;;  %v2070_v21 = vld [vmem:[#allocation9 + $0x30] sm:$0xff]  ;;  %v2096_v53 = vld [vmem:[#allocation9 + $0x100] sm:$0xff] }
 0x17b   :  { %v3098_v41 = vpop.f32.mrf.mxu0  ;;  %v4491_v47 = vpop.f32.mrf.mxu1  ;;  %3352 = vmatpush3.msra.mxu0 %v2070_v21  ;;  %3389 = vmatpush3.msra.mxu1 %v2101_v17  ;;  %v2098_v30 = vld [vmem:[#allocation9 + $0x110] sm:$0xff]  ;;  %v2064_v21 = vld [vmem:[#allocation9] sm:$0xff] }
 0x17c   :  { %v3099_v58 = vadd.f32 %v3098_v41, %v3097_v35  ;;  %v4496_v59 = vmax.f32 %v827_v60, %v1075_v44  ;;  %3353 = vmatprep.subr.mxu0 %v2085_v54  ;;  %3390 = vmatprep.subr.mxu1 %v2116_v26  ;;  %v2066_v35 = vld [vmem:[#allocation9 + $0x10] sm:$0xff]  ;;  %v2081_v44 = vld [vmem:[#allocation9 + $0x88] sm:$0xff] }
 0x17d   :  { %v3100_v23 = vpop.f32.mrf.mxu0  ;;  %v3625_v52 = vpop.f32.mrf.mxu1  ;;  %3354 = vmatpush3.msra.mxu0 %v2069_v2  ;;  %3391 = vmatpush3.msra.mxu1 %v2100_v4  ;;  %v2065_v41 = vld [vmem:[#allocation9 + $0x8] sm:$0xff] }
 0x17e   :  { %v1080_v27 = vadd.f32 %v3099_v58, %v4473_v24  ;;  %3355 = vmatprep.subr.mxu0 %v2084_v49  ;;  %3392 = vmatprep.subr.mxu1 %v2115_v16 }
 0x17f   :  { %v3101_v8 = vpop.f32.mrf.mxu0  ;;  %3356 = vmatpush3.msra.mxu0 %v2068_v13  ;;  %3393 = vmatpush3.msra.mxu1 %v2099_v15  ;;  %v1098_v43 = vpop.f32.mrf.mxu1 }
 0x180   :  { %v4502_v60 = vmax.f32 %v828_v6, %v1080_v27  ;;  %v3102_v11 = vadd.f32 %v3101_v8, %v3100_v23  ;;  %3357 = vmatprep.subr.mxu0 %v2083_v33  ;;  %3394 = vmatprep.subr.mxu1 %v2114_v61  ;;  %v2159_v23 = vld [vmem:[#allocation9 + $0x2f8] sm:$0xff] }
 0x181   :  { %v3103_v24 = vpop.f32.mrf.mxu0  ;;  %3358 = vmatpush3.msra.mxu0 %v2067_v29  ;;  %3395 = vmatpush3.msra.mxu1 %v2098_v30 }
 0x182   :  { %v1083_v25 = vadd.f32 %v3102_v11, %v1082_v0  ;;  %3359 = vmatprep.subr.mxu0 %v2082_v57  ;;  %3396 = vmatprep.subr.mxu1 %v2113_v1 }
 0x183   :  { %v3104_v34 = vpop.f32.mrf.mxu0  ;;  %3360 = vmatpush3.msra.mxu0 %v2066_v35  ;;  %3397 = vmatpush3.msra.mxu1 %v2097_v38 }
 0x184   :  { %v4507_v6 = vmax.f32 %v829_v19, %v1083_v25  ;;  %v3105_v62 = vadd.f32 %v3104_v34, %v3103_v24  ;;  %3361 = vmatprep.subr.mxu0 %v2081_v44  ;;  %3398 = vmatprep.subr.mxu1 %v2112_v46  ;;  %v2191_v19 = vld [vmem:[#allocation9 + $0x3f8] sm:$0xff] }
 0x185   :  { %v3106_v0 = vpop.f32.mrf.mxu0  ;;  %3362 = vmatpush3.msra.mxu0 %v2065_v41  ;;  %3399 = vmatpush3.msra.mxu1 %v2096_v53 }
 0x186   :  { %v1088_v48 = vadd.f32 %v4471_v50, %v3105_v62  ;;  %3363 = vmatprep.subr.mxu0 %v2080_v12  ;;  %3438 = vmatprep.subr.mxu1 %v2191_v19 }
 0x187   :  { %v3107_v63 = vpop.f32.mrf.mxu0  ;;  %3364 = vmatpush3.msra.mxu0 %v2064_v21 }
 0x188   :  { %v4513_v56 = vmax.f32 %v830_v10, %v1088_v48  ;;  %v3108_v58 = vadd.f32 %v3107_v63, %v3106_v0  ;;  %3403 = vmatprep.subr.mxu0 %v2159_v23 }
 0x189   :  { %v3109_v17 = vpop.f32.mrf.mxu0  ;;  %v3151_v50 = vpop.f32.mrf.mxu1 }
 0x18a   :  { %v1091_v52 = vadd.f32 %v4480_v7, %v3108_v58 }
 0x18b   :  { %v3110_v54 = vpop.f32.mrf.mxu0  ;;  %v3152_v26 = vpop.f32.mrf.mxu1 }
 0x18c   :  { %v4519_v27 = vmax.f32 %v831_v28, %v1091_v52  ;;  %v3111_v3 = vadd.f32 %v3110_v54, %v3109_v17  ;;  %v3153_v5 = vadd.f32 %v3152_v26, %v3151_v50 }
 0x18d   :  { %v3112_v10 = vpop.f32.mrf.mxu0  ;;  %v3154_v2 = vpop.f32.mrf.mxu1 }
 0x18e   :  { %v1096_v4 = vadd.f32 %v3111_v3, %v4491_v47 }
 0x18f   :  { %v3113_v8 = vpop.f32.mrf.mxu0  ;;  %v3155_v49 = vpop.f32.mrf.mxu1 }
 0x190   :  { %v3114_v16 = vadd.f32 %v3113_v8, %v3112_v10  ;;  %v3156_v11 = vadd.f32 %v3155_v49, %v3154_v2  ;;  %v4525_v7 = vmax.f32 %v832_v36, %v1096_v4 }
 0x191   :  { %v3115_v13 = vpop.f32.mrf.mxu0  ;;  %v3157_v15 = vpop.f32.mrf.mxu1 }
 0x192   :  { %v1099_v9 = vadd.f32 %v3114_v16, %v1098_v43 }
 0x193   :  { %v3116_v18 = vpop.f32.mrf.mxu0  ;;  %v3158_v28 = vpop.f32.mrf.mxu1 }
 0x194   :  { %v3117_v24 = vadd.f32 %v3116_v18, %v3115_v13  ;;  %v3159_v33 = vadd.f32 %v3158_v28, %v3157_v15  ;;  %v4530_v47 = vmax.f32 %v833_v45, %v1099_v9 }
 0x195   :  { %v3118_v61 = vpop.f32.mrf.mxu0  ;;  %v3160_v25 = vpop.f32.mrf.mxu1 }
 0x196   :  { %v1104_v29 = vadd.f32 %v4488_v37, %v3117_v24 }
 0x197   :  { %v3119_v30 = vpop.f32.mrf.mxu0  ;;  %v3161_v20 = vpop.f32.mrf.mxu1 }
 0x198   :  { %v4536_v32 = vmax.f32 %v834_v55, %v1104_v29  ;;  %v3162_v36 = vadd.f32 %v3161_v20, %v3160_v25 }
 0x199   :  { %v3163_v34 = vpop.f32.mrf.mxu1  ;;  %v3644_v57 = vpop.f32.mrf.mxu0 }
 0x19a   :  { %v4538_v1 = vadd.f32 %v3644_v57, %v3159_v33 }
 0x19b   :  { %v3164_v62 = vpop.f32.mrf.mxu1  ;;  %v1348_v31 = vpop.f32.mrf.mxu0 }
 0x19c   :  { %v1396_v40 = vmax.f32 %v4486_v22, %v4538_v1  ;;  %v3165_v45 = vadd.f32 %v3164_v62, %v3163_v34  ;;  %v4542_v35 = vadd.f32 %v3153_v5, %v1348_v31 }
 0x19d   :  { %v3166_v37 = vpop.f32.mrf.mxu1  ;;  %v3645_v38 = vpop.f32.mrf.mxu0 }
 0x19e   :  { %v4546_v51 = vadd.f32 %v3645_v38, %v3162_v36 }
 0x19f   :  { %v3167_v55 = vpop.f32.mrf.mxu1  ;;  %v1351_v0 = vpop.f32.mrf.mxu0 }
 0x1a0   :  { %v3168_v44 = vadd.f32 %v3167_v55, %v3166_v37  ;;  %v4550_v46 = vadd.f32 %v3156_v11, %v1351_v0 }
 0x1a1   :  { %v3169_v48 = vpop.f32.mrf.mxu1  ;;  %v3648_v41 = vpop.f32.mrf.mxu0 }
 0x1a3   :  { %v3170_v63 = vpop.f32.mrf.mxu1  ;;  %v1364_v12 = vpop.f32.mrf.mxu0 }
 0x1a4   :  { %v3171_v19 = vadd.f32 %v3170_v63, %v3169_v48  ;;  %v1365_v58 = vadd.f32 %v3165_v45, %v1364_v12 }
 0x1a5   :  { %v3172_v21 = vpop.f32.mrf.mxu1  ;;  %v3649_v17 = vpop.f32.mrf.mxu0 }
 0x1a6   :  { %v4554_v50 = vadd.f32 %v3648_v41, %v3171_v19  ;;  %v1398_v23 = vmax.f32 %v4502_v60, %v1365_v58 }
 0x1a7   :  { %v3173_v52 = vpop.f32.mrf.mxu1  ;;  %v1367_v54 = vpop.f32.mrf.mxu0 }
 0x1a8   :  { %v1400_v26 = vmax.f32 %v4513_v56, %v4554_v50  ;;  %v3174_v3 = vadd.f32 %v3173_v52, %v3172_v21  ;;  %v4559_v5 = vadd.f32 %v3168_v44, %v1367_v54 }
 0x1a9   :  { %v3175_v10 = vpop.f32.mrf.mxu1  ;;  %v3652_v2 = vpop.f32.mrf.mxu0 }
 0x1aa   :  { %v4561_v4 = vadd.f32 %v3649_v17, %v3174_v3 }
 0x1ab   :  { %v3176_v49 = vpop.f32.mrf.mxu1  ;;  %v1380_v16 = vpop.f32.mrf.mxu0 }
 0x1ac   :  { %v3177_v11 = vadd.f32 %v3176_v49, %v3175_v10 }
 0x1ad   :  { %v3178_v13 = vpop.f32.mrf.mxu1  ;;  %v3653_v15 = vpop.f32.mrf.mxu0 }
 0x1ae   :  { %v1381_v9 = vadd.f32 %v3177_v11, %v1380_v16 }
 0x1af   :  { %v3179_v56 = vpop.f32.mrf.mxu1  ;;  %v1383_v18 = vpop.f32.mrf.mxu0 }
 0x1b0   :  { %v1402_v28 = vmax.f32 %v4525_v7, %v1381_v9  ;;  %v3180_v24 = vadd.f32 %v3179_v56, %v3178_v13 }
 0x1b1   :  { %v3181_v33 = vpop.f32.mrf.mxu1 }
 0x1b2   :  { %v4568_v61 = vadd.f32 %v3180_v24, %v1383_v18 }
 0x1b3   :  { %v3182_v25 = vpop.f32.mrf.mxu1 }
 0x1b4   :  { %v3183_v30 = vadd.f32 %v3182_v25, %v3181_v33 }
 0x1b5   :  { %v3184_v20 = vpop.f32.mrf.mxu1 }
 0x1b6   :  { %v4572_v36 = vadd.f32 %v3652_v2, %v3183_v30 }
 0x1b7   :  { %v3185_v34 = vpop.f32.mrf.mxu1 }
 0x1b8   :  { %v1404_v57 = vmax.f32 %v4536_v32, %v4572_v36 }
 0x1b9   :  { %v3217_v62 = vpop.f32.mrf.mxu0  ;;  %v3672_v31 = vpop.f32.mrf.mxu1 }
 0x1bb   :  { %v3218_v45 = vpop.f32.mrf.mxu0  ;;  %v1633_v7 = vpop.f32.mrf.mxu1 }
 0x1bd   :  { %v3220_v37 = vpop.f32.mrf.mxu0  ;;  %v3673_v38 = vpop.f32.mrf.mxu1 }
 0x1bf   :  { %v3221_v55 = vpop.f32.mrf.mxu0  ;;  %v4576_v0 = vpop.f32.mrf.mxu1 }
 0x1c1   :  { %v3223_v44 = vpop.f32.mrf.mxu0  ;;  %v3676_v48 = vpop.f32.mrf.mxu1 }
 0x1c3   :  { %v3224_v41 = vpop.f32.mrf.mxu0  ;;  %v1649_v63 = vpop.f32.mrf.mxu1 }
 0x1c5   :  { %v3226_v12 = vpop.f32.mrf.mxu0  ;;  %v4578_v19 = vpop.f32.mrf.mxu1 }
 0x1c7   :  { %v3227_v58 = vpop.f32.mrf.mxu0  ;;  %v4580_v21 = vpop.f32.mrf.mxu1 }
 0x1c9   :  { %v3229_v32 = vpop.f32.mrf.mxu0  ;;  %v3680_v17 = vpop.f32.mrf.mxu1 }
 0x1cb   :  { %v3230_v50 = vpop.f32.mrf.mxu0  ;;  %v1665_v52 = vpop.f32.mrf.mxu1 }
 0x1cc   :  { %v3231_v54 = vadd.f32 %v3230_v50, %v3229_v32 }
 0x1cd   :  { %v4582_v3 = vpop.f32.mrf.mxu0  ;;  %v3681_v10 = vpop.f32.mrf.mxu1 }
 0x1ce   :  { %v1650_v2 = vadd.f32 %v3231_v54, %v1649_v63 }
 0x1cf   :  { %v3233_v49 = vpop.f32.mrf.mxu0  ;;  %v4588_v56 = vpop.f32.mrf.mxu1 }
 0x1d0   :  { %v4584_v16 = vmax.f32 %v1398_v23, %v1650_v2  ;;  %v3225_v2 = vadd.f32 %v3224_v41, %v3223_v44 }
 0x1d1   :  { %v3235_v11 = vpop.f32.mrf.mxu0 }
 0x1d2   :  { %v1642_v29 = vadd.f32 %v3672_v31, %v3225_v2 }
 0x1d3   :  { %v3236_v13 = vpop.f32.mrf.mxu0 }
 0x1d4   :  { %v3237_v15 = vadd.f32 %v3236_v13, %v3235_v11  ;;  %v1681_v44 = vmax.f32 %v1396_v40, %v1642_v29 }
 0x1d5   :  { %v4586_v9 = vpop.f32.mrf.mxu0 }
 0x1d6   :  { %v1658_v18 = vadd.f32 %v3676_v48, %v3237_v15  ;;  %v3219_v15 = vadd.f32 %v3218_v45, %v3217_v62 }
 0x1d7   :  { %v3239_v24 = vpop.f32.mrf.mxu0 }
 0x1d8   :  { %v4590_v33 = vmax.f32 %v1400_v26, %v1658_v18 }
 0x1d9   :  { %v3241_v25 = vpop.f32.mrf.mxu0  ;;  %v3283_v30 = vpop.f32.mrf.mxu1 }
 0x1db   :  { %v3242_v20 = vpop.f32.mrf.mxu0  ;;  %v3284_v36 = vpop.f32.mrf.mxu1 }
 0x1dc   :  { %v3243_v34 = vadd.f32 %v3242_v20, %v3241_v25  ;;  %v3228_v25 = vadd.f32 %v3227_v58, %v3226_v12  ;;  %v3285_v31 = vadd.f32 %v3284_v36, %v3283_v30 }
 0x1dd   :  { %v4592_v63 = vpop.f32.mrf.mxu0  ;;  %v3286_v23 = vpop.f32.mrf.mxu1 }
 0x1de   :  { %v1666_v32 = vadd.f32 %v3243_v34, %v1665_v52  ;;  %v1634_v34 = vadd.f32 %v3219_v15, %v1633_v7  ;;  %v1645_v45 = vadd.f32 %v3673_v38, %v3228_v25 }
 0x1df   :  { %v4594_v50 = vpop.f32.mrf.mxu0  ;;  %v3287_v54 = vpop.f32.mrf.mxu1 }
 0x1e0   :  { %v4596_v10 = vmax.f32 %v1402_v28, %v1666_v32  ;;  %v3222_v28 = vadd.f32 %v3221_v55, %v3220_v37  ;;  %v3288_v38 = vadd.f32 %v3287_v54, %v3286_v23 }
 0x1e1   :  { %v3247_v11 = vpop.f32.mrf.mxu0  ;;  %v3289_v48 = vpop.f32.mrf.mxu1 }
 0x1e2   :  { %v1637_v55 = vadd.f32 %v3222_v28, %v4576_v0 }
 0x1e3   :  { %v3248_v13 = vpop.f32.mrf.mxu0  ;;  %v3290_v26 = vpop.f32.mrf.mxu1 }
 0x1e4   :  { %v3249_v18 = vadd.f32 %v3248_v13, %v3247_v11  ;;  %v3291_v53 = vadd.f32 %v3290_v26, %v3289_v48  ;;  %v4764_v11 = vmax.f32 %v4478_v14, %v4550_v46 }
 0x1e5   :  { %v3250_v60 = vpop.f32.mrf.mxu0  ;;  %v3292_v8 = vpop.f32.mrf.mxu1 }
 0x1e6   :  { %v1674_v20 = vadd.f32 %v3680_v17, %v3249_v18  ;;  %v1680_v48 = vmax.f32 %v4764_v11, %v1637_v55 }
 0x1e7   :  { %v3251_v43 = vpop.f32.mrf.mxu0  ;;  %v3293_v52 = vpop.f32.mrf.mxu1 }
 0x1e8   :  { %v4598_v39 = vmax.f32 %v1404_v57, %v1674_v20  ;;  %v3294_v60 = vadd.f32 %v3293_v52, %v3292_v8  ;;  %v4762_v43 = vmax.f32 %v4469_v42, %v4542_v35  ;;  %v3234_v35 = vadd.f32 %v3233_v49, %v4582_v3 }
 0x1e9   :  { %v4600_v32 = vpop.f32.mrf.mxu1  ;;  %v3700_v62 = vpop.f32.mrf.mxu0 }
 0x1ea   :  { %v1927_v41 = vadd.f32 %v3700_v62, %v3291_v53  ;;  %v1679_v57 = vmax.f32 %v4762_v43, %v1634_v34  ;;  %v4763_v53 = vmax.f32 %v4496_v59, %v4546_v51  ;;  %v3240_v59 = vadd.f32 %v3239_v24, %v4586_v9 }
 0x1eb   :  { %v4605_v12 = vpop.f32.mrf.mxu1  ;;  %v1918_v58 = vpop.f32.mrf.mxu0  ;;  %v1653_v18 = vadd.f32 %v3234_v35, %v4580_v21 }
 0x1ec   :  { %v4610_v7 = vmax.f32 %v1681_v44, %v1927_v41  ;;  %v1919_v37 = vadd.f32 %v3285_v31, %v1918_v58  ;;  %v1682_v8 = vmax.f32 %v4763_v53, %v1645_v45  ;;  %v1661_v34 = vadd.f32 %v4578_v19, %v3240_v59 }
 0x1ed   :  { %v3298_v17 = vpop.f32.mrf.mxu1  ;;  %v3701_v22 = vpop.f32.mrf.mxu0  ;;  %v4765_v44 = vmax.f32 %v4507_v6, %v4559_v5  ;;  %v4766_v41 = vmax.f32 %v4519_v27, %v4561_v4  ;;  %v3297_v35 = vadd.f32 %v4605_v12, %v4600_v32 }
 0x1ee   :  { %v1988_v1 = vmin.f32 %v4610_v7, 0.0  ;;  %v4614_v40 = vmax.f32 %v1679_v57, %v1919_v37  ;;  %v1930_v29 = vadd.f32 %v3701_v22, %v3294_v60  ;;  %vm1977_vm1 = vcmp.gt.f32.partialorder %v4610_v7, 0.0 }
 0x1ef   :  { %v3299_v30 = vpop.f32.mrf.mxu1  ;;  %v1921_v42 = vpop.f32.mrf.mxu0  ;;  %v1684_v62 = vmax.f32 %v4765_v44, %v1653_v18  ;;  %v1686_v58 = vmax.f32 %v4766_v41, %v1661_v34  ;;  %v2173_v34 = vld [vmem:[#allocation9 + $0x368] sm:$0xff]  ;;  %v2188_v44 = vld [vmem:[#allocation9 + $0x3e0] sm:$0xff]  ;;  %v2187_v41 = vld [vmem:[#allocation9 + $0x3d8] sm:$0xff] }
 0x1f0   :  { %v2001_v36 = vmul.f32 1.442695, %v1988_v1  ;;  %v1986_v2 = vmin.f32 %v4614_v40, 0.0  ;;  %v4621_v0 = vmax.f32 %v1682_v8, %v1930_v29  ;;  %v1922_v13 = vadd.f32 %v3288_v38, %v1921_v42 }
 0x1f1   :  { %v3301_v26 = vpop.f32.mrf.mxu1  ;;  %v3704_v15 = vpop.f32.mrf.mxu0  ;;  %v3300_v20 = vadd.f32 %v3299_v30, %v3298_v17  ;;  %v3246_v42 = vadd.f32 %v4594_v50, %v4592_v63  ;;  %vm1975_vm3 = vcmp.gt.f32.partialorder %v4614_v40, 0.0 }
 0x1f2   :  { %v1997_v51 = vmul.f32 1.442695, %v1986_v2  ;;  %v1989_v23 = vmin.f32 %v4621_v0, 0.0  ;;  %3955 = vpow2.f32 %v2001_v36  ;;  %v4628_v54 = vmax.f32 %v1680_v48, %v1922_v13 }
 0x1f3   :  { %v3302_v3 = vpop.f32.mrf.mxu1  ;;  %v1934_v49 = vpop.f32.mrf.mxu0  ;;  %vm1978_vm0 = vcmp.gt.f32.partialorder %v4621_v0, 0.0  ;;  %v1669_v50 = vadd.f32 %v3246_v42, %v4588_v56  ;;  %v2185_v42 = vld [vmem:[#allocation9 + $0x3c8] sm:$0xff] }
 0x1f4   :  { %v2003_v25 = vmul.f32 1.442695, %v1989_v23  ;;  %3957 = vpow2.f32 %v1997_v51  ;;  %v1987_v14 = vmin.f32 %v4628_v54, 0.0  ;;  %v3303_v4 = vadd.f32 %v3302_v3, %v3301_v26  ;;  %v2175_v3 = vld [vmem:[#allocation9 + $0x378] sm:$0xff] }
 0x1f5   :  { %v3304_v46 = vpop.f32.mrf.mxu1  ;;  %v3705_v52 = vpop.f32.mrf.mxu0  ;;  %v1935_v32 = vadd.f32 %v3297_v35, %v1934_v49  ;;  %vm1976_vm2 = vcmp.gt.f32.partialorder %v4628_v54, 0.0  ;;  %v2143_v49 = vld [vmem:[#allocation9 + $0x278] sm:$0xff] }
 0x1f6   :  { %3959 = vpow2.f32 %v2003_v25  ;;  %v1999_v9 = vmul.f32 1.442695, %v1987_v14  ;;  %v1943_v48 = vadd.f32 %v3704_v15, %v3303_v4  ;;  %v2190_v15 = vld [vmem:[#allocation9 + $0x3f0] sm:$0xff]  ;;  %v2139_v4 = vld [vmem:[#allocation9 + $0x258] sm:$0xff] }
 0x1f7   :  { %v3305_v24 = vpop.f32.mrf.mxu1  ;;  %v1937_v28 = vpop.f32.mrf.mxu0 }
 0x1f8   :  { %v3306_v45 = vadd.f32 %v3305_v24, %v3304_v46  ;;  %v1938_v31 = vadd.f32 %v3300_v20, %v1937_v28  ;;  %3961 = vpow2.f32 %v1999_v9  ;;  %v2174_v20 = vld [vmem:[#allocation9 + $0x370] sm:$0xff]  ;;  %v4669_v14 = vmax.f32 %v4590_v33, %v1943_v48  ;;  %v2189_v46 = vld [vmem:[#allocation9 + $0x3e8] sm:$0xff] }
 0x1f9   :  { %v4636_v21 = vpop.f32.mrf.mxu1  ;;  %v4638_v60 = vpop.f32.mrf.mxu0  ;;  %v4674_v9 = vmax.f32 %v4584_v16, %v1935_v32  ;;  %v4767_v24 = vmax.f32 %v4530_v47, %v4568_v61  ;;  %v2142_v28 = vld [vmem:[#allocation9 + $0x270] sm:$0xff]  ;;  %v2141_v16 = vld [vmem:[#allocation9 + $0x268] sm:$0xff]  ;;  %v2156_v47 = vld [vmem:[#allocation9 + $0x2e0] sm:$0xff] }
 0x1fa   :  { %v1946_v19 = vadd.f32 %v3705_v52, %v3306_v45  ;;  %v4643_v43 = vmax.f32 %v1684_v62, %v1938_v31  ;;  %v2158_v52 = vld [vmem:[#allocation9 + $0x2f0] sm:$0xff]  ;;  %v2172_v62 = vld [vmem:[#allocation9 + $0x360] sm:$0xff]  ;;  %v2171_v61 = vld [vmem:[#allocation9 + $0x358] sm:$0xff]  ;;  %vm1981_vm6 = vcmp.gt.f32.partialorder %v4669_v14, 0.0 }
 0x1fb   :  { %v4645_v57 = vpop.f32.mrf.mxu1  ;;  %v4647_v37 = vpop.f32.mrf.mxu0  ;;  %v1688_v33 = vmax.f32 %v4767_v24, %v1669_v50  ;;  %v2153_v48 = vld [vmem:[#allocation9 + $0x2c8] sm:$0xff]  ;;  %v2151_v50 = vld [vmem:[#allocation9 + $0x2b8] sm:$0xff]  ;;  %v2182_v32 = vld [vmem:[#allocation9 + $0x3b0] sm:$0xff]  ;;  %vm1979_vm7 = vcmp.gt.f32.partialorder %v4674_v9, 0.0 }
 0x1fc   :  { %v4649_v6 = vmax.f32 %v1686_v58, %v1946_v19  ;;  %v1991_v5 = vmin.f32 %v4643_v43, 0.0  ;;  %vm1980_vm4 = vcmp.gt.f32.partialorder %v4643_v43, 0.0  ;;  %v2132_v24 = vld [vmem:[#allocation9 + $0x220] sm:$0xff] }
 0x1fd   :  { %v3310_v55 = vpop.f32.mrf.mxu1  ;;  %v3709_v17 = vpop.f32.mrf.mxu0 }
 0x1fe   :  { %v1993_v22 = vmin.f32 %v4649_v6, 0.0  ;;  %v2007_v1 = vmul.f32 1.442695, %v1991_v5  ;;  %v1990_v5 = vmin.f32 %v4674_v9, 0.0  ;;  %v2155_v17 = vld [vmem:[#allocation9 + $0x2d8] sm:$0xff]  ;;  %vm1982_vm5 = vcmp.gt.f32.partialorder %v4649_v6, 0.0 }
 0x1ff   :  { %v3311_v53 = vpop.f32.mrf.mxu1  ;;  %v3956_v8 = vpop.eup %3955 }
 0x200   :  { %v2011_v27 = vmul.f32 1.442695, %v1993_v22  ;;  %3963 = vpow2.f32 %v2007_v1  ;;  %v2925_v2 = vadd.f32 -1.0, %v3956_v8  ;;  %v3312_v13 = vadd.f32 %v3311_v53, %v3310_v55  ;;  %v1953_v51 = vpop.f32.mrf.mxu0  ;;  %v2140_v55 = vld [vmem:[#allocation9 + $0x260] sm:$0xff]  ;;  %v2186_v1 = vld [vmem:[#allocation9 + $0x3d0] sm:$0xff] }
 0x201   :  { %v4653_v29 = vpop.f32.mrf.mxu1  ;;  %v3958_v38 = vpop.eup %3957  ;;  %v2005_v35 = vmul.f32 1.442695, %v1990_v5  ;;  %v2145_v5 = vld [vmem:[#allocation9 + $0x288] sm:$0xff] }
 0x202   :  { %3965 = vpow2.f32 %v2011_v27  ;;  %v2923_v63 = vadd.f32 -1.0, %v3958_v38  ;;  %v2032_v12 = vsel %vm1977_vm1, %v4610_v7, %v2925_v2  ;;  %v2170_v38 = vld [vmem:[#allocation9 + $0x350] sm:$0xff] }
 0x203   :  { %v3960_v30 = vpop.eup %3959  ;;  %v4659_v36 = vpop.f32.mrf.mxu1  ;;  %v2138_v2 = vld [vmem:[#allocation9 + $0x250] sm:$0xff] }
 0x204   :  { %v2926_v11 = vadd.f32 -1.0, %v3960_v30  ;;  %v2030_v7 = vsel %vm1975_vm3, %v4614_v40, %v2923_v63  ;;  %v1992_v40 = vmin.f32 %v4669_v14, 0.0  ;;  %v2154_v30 = vld [vmem:[#allocation9 + $0x2d0] sm:$0xff]  ;;  %v2167_v63 = vld [vmem:[#allocation9 + $0x338] sm:$0xff] }
 0x205   :  { %v3316_v26 = vpop.f32.mrf.mxu1  ;;  %v3962_v59 = vpop.eup %3961 }
 0x206   :  { %v2033_v23 = vsel %vm1978_vm0, %v4621_v0, %v2926_v11  ;;  %v2924_v18 = vadd.f32 -1.0, %v3962_v59  ;;  %v1954_v0 = vadd.f32 %v3312_v13, %v1953_v51  ;;  %v2009_v8 = vmul.f32 1.442695, %v1992_v40  ;;  %v2169_v11 = vld [vmem:[#allocation9 + $0x348] sm:$0xff]  ;;  %v2184_v26 = vld [vmem:[#allocation9 + $0x3c0] sm:$0xff]  ;;  %v2146_v40 = vld [vmem:[#allocation9 + $0x290] sm:$0xff] }
 0x207   :  { %2374 = vmatprep.mubr.f32.mxu1 %v2033_v23  ;;  %v3317_v25 = vpop.f32.mrf.mxu1  ;;  %v2137_v59 = vld [vmem:[#allocation9 + $0x248] sm:$0xff]  ;;  %v2168_v51 = vld [vmem:[#allocation9 + $0x340] sm:$0xff] }
 0x208   :  { %2375 = vmatmul.mubr.f32.vlgmr.msra.gmra.mxu1 %v2032_v12  ;;  %v2031_v56 = vsel %vm1976_vm2, %v4628_v54, %v2924_v18  ;;  %v2157_v54 = vld [vmem:[#allocation9 + $0x2e8] sm:$0xff]  ;;  %v4680_v31 = vmax.f32 %v1688_v33, %v1954_v0  ;;  %3967 = vpow2.f32 %v2009_v8  ;;  %v2152_v23 = vld [vmem:[#allocation9 + $0x2c0] sm:$0xff]  ;;  %v2135_v12 = vld [vmem:[#allocation9 + $0x238] sm:$0xff] }
 0x209   :  { %3439 = vmatpush3.msra.mxu1 %v2175_v3  ;;  %2304 = vmatprep.mubr.f32.mxu0 %v2031_v56  ;;  %3969 = vpow2.f32 %v2005_v35  ;;  %v2183_v3 = vld [vmem:[#allocation9 + $0x3b8] sm:$0xff]  ;;  %v2166_v18 = vld [vmem:[#allocation9 + $0x330] sm:$0xff]  ;;  %v2181_v25 = vld [vmem:[#allocation9 + $0x3a8] sm:$0xff] }
 0x20a   :  { %3440 = vmatprep.subr.mxu1 %v2190_v15  ;;  %2305 = vmatmul.mubr.f32.vlgmr.msra.gmra.mxu0 %v2030_v7  ;;  %v1995_v27 = vmin.f32 %v4680_v31, 0.0  ;;  %v2150_v15 = vld [vmem:[#allocation9 + $0x2b0] sm:$0xff]  ;;  %v2165_v0 = vld [vmem:[#allocation9 + $0x328] sm:$0xff]  ;;  %v2164_v7 = vld [vmem:[#allocation9 + $0x320] sm:$0xff]  ;;  %vm1984_vm8 = vcmp.gt.f32.partialorder %v4680_v31, 0.0 }
 0x20b   :  { %3441 = vmatpush3.msra.mxu1 %v2174_v20  ;;  %3404 = vmatpush3.msra.mxu0 %v2143_v49  ;;  %v2134_v20 = vld [vmem:[#allocation9 + $0x230] sm:$0xff]  ;;  %v2149_v56 = vld [vmem:[#allocation9 + $0x2a8] sm:$0xff]  ;;  %v2180_v49 = vld [vmem:[#allocation9 + $0x3a0] sm:$0xff] }
 0x20c   :  { %3442 = vmatprep.subr.mxu1 %v2189_v46  ;;  %3405 = vmatprep.subr.mxu0 %v2158_v52  ;;  %v2015_v13 = vmul.f32 1.442695, %v1995_v27  ;;  %v2133_v46 = vld [vmem:[#allocation9 + $0x228] sm:$0xff]  ;;  %v2148_v52 = vld [vmem:[#allocation9 + $0x2a0] sm:$0xff]  ;;  %v2163_v33 = vld [vmem:[#allocation9 + $0x318] sm:$0xff] }
 0x20d   :  { %v3964_v45 = vpop.eup %3963  ;;  %3443 = vmatpush3.msra.mxu1 %v2173_v34  ;;  %3406 = vmatpush3.msra.mxu0 %v2142_v28  ;;  %v2179_v34 = vld [vmem:[#allocation9 + $0x398] sm:$0xff] }
 0x20e   :  { %3444 = vmatprep.subr.mxu1 %v2188_v44  ;;  %v2928_v58 = vadd.f32 -1.0, %v3964_v45  ;;  %3407 = vmatprep.subr.mxu0 %v2157_v54  ;;  %3971 = vpow2.f32 %v2015_v13  ;;  %v2147_v28 = vld [vmem:[#allocation9 + $0x298] sm:$0xff]  ;;  %v2178_v44 = vld [vmem:[#allocation9 + $0x390] sm:$0xff]  ;;  %v2221_v13 = vld [vmem:[#allocation9 + $0x4e8] sm:$0xff] }
 0x20f   :  { %v3966_v19 = vpop.eup %3965  ;;  %3445 = vmatpush3.msra.mxu1 %v2172_v62  ;;  %3408 = vmatpush3.msra.mxu0 %v2141_v16  ;;  %v2131_v54 = vld [vmem:[#allocation9 + $0x218] sm:$0xff]  ;;  %v2162_v45 = vld [vmem:[#allocation9 + $0x310] sm:$0xff]  ;;  %v3315_v16 = vadd.f32 %v4659_v36, %v4653_v29  ;;  %v2160_v29 = vld [vmem:[#allocation9 + $0x300] sm:$0xff] }
 0x210   :  { %3446 = vmatprep.subr.mxu1 %v2187_v41  ;;  %v2035_v22 = vsel %vm1980_vm4, %v4643_v43, %v2928_v58  ;;  %v2930_v53 = vadd.f32 -1.0, %v3966_v19  ;;  %3409 = vmatprep.subr.mxu0 %v2156_v47  ;;  %v2177_v41 = vld [vmem:[#allocation9 + $0x388] sm:$0xff]  ;;  %v2130_v47 = vld [vmem:[#allocation9 + $0x210] sm:$0xff]  ;;  %v3309_v58 = vadd.f32 %v4645_v57, %v4636_v21  ;;  %v2144_v36 = vld [vmem:[#allocation9 + $0x280] sm:$0xff] }
 0x211   :  { %3447 = vmatpush3.msra.mxu1 %v2171_v61  ;;  %3410 = vmatpush3.msra.mxu0 %v2140_v55  ;;  %v2161_v19 = vld [vmem:[#allocation9 + $0x308] sm:$0xff]  ;;  %v2176_v55 = vld [vmem:[#allocation9 + $0x380] sm:$0xff]  ;;  %v2239_v27 = vld [vmem:[#allocation9 + $0x578] sm:$0xff] }
 0x212   :  { %2444 = vmatprep.mubr.f32.mxu0 %v2035_v22  ;;  %3411 = vmatprep.subr.mxu0 %v2155_v17  ;;  %v2037_v43 = vsel %vm1982_vm5, %v4649_v6, %v2930_v53  ;;  %v2136_v6 = vld [vmem:[#allocation9 + $0x240] sm:$0xff]  ;;  %v2129_v17 = vld [vmem:[#allocation9 + $0x208] sm:$0xff]  ;;  %v1959_v53 = vadd.f32 %v4638_v60, %v3315_v16  ;;  %v1951_v21 = vadd.f32 %v3309_v58, %v4647_v37  ;;  %v2207_v60 = vld [vmem:[#allocation9 + $0x478] sm:$0xff] }
 0x213   :  { %3448 = vmatprep.subr.mxu1 %v2186_v1  ;;  %3412 = vmatpush3.msra.mxu0 %v2139_v4  ;;  %v2128_v57 = vld [vmem:[#allocation9 + $0x200] sm:$0xff]  ;;  %v2227_v16 = vld [vmem:[#allocation9 + $0x518] sm:$0xff] }
 0x214   :  { %3449 = vmatpush3.msra.mxu1 %v2170_v38  ;;  %3413 = vmatprep.subr.mxu0 %v2154_v30  ;;  %v2223_v38 = vld [vmem:[#allocation9 + $0x4f8] sm:$0xff]  ;;  %v4699_v37 = vmax.f32 %v4598_v39, %v1959_v53  ;;  %v2206_v39 = vld [vmem:[#allocation9 + $0x470] sm:$0xff]  ;;  %v2208_v53 = vld [vmem:[#allocation9 + $0x480] sm:$0xff] }
 0x215   :  { %3450 = vmatprep.subr.mxu1 %v2185_v42  ;;  %2514 = vmatprep.mubr.f32.mxu1 %v2037_v43  ;;  %v3968_v62 = vpop.eup %3967  ;;  %v4098_v42 = vmov 0.0   ;;  %v2238_v43 = vld [vmem:[#allocation9 + $0x570] sm:$0xff] }
 0x216   :  { %3414 = vmatpush3.msra.mxu0 %v2138_v2  ;;  %3451 = vmatpush3.msra.mxu1 %v2169_v11  ;;  %v3970_v61 = vpop.eup %3969  ;;  %v2929_v22 = vadd.f32 -1.0, %v3968_v62  ;;  %v4703_v2 = vmax.f32 %v4596_v10, %v1951_v21  ;;  %v2205_v10 = vld [vmem:[#allocation9 + $0x468] sm:$0xff]  ;;  %v2228_v62 = vld [vmem:[#allocation9 + $0x520] sm:$0xff]  ;;  %vm1985_vm9 = vcmp.gt.f32.partialorder %v4699_v37, 0.0 }
 0x217   :  { %3415 = vmatprep.subr.mxu0 %v2153_v48  ;;  %3452 = vmatprep.subr.mxu1 %v2184_v26  ;;  %v2927_v8 = vadd.f32 -1.0, %v3970_v61  ;;  %v2237_v48 = vld [vmem:[#allocation9 + $0x568] sm:$0xff]  ;;  %v2236_v26 = vld [vmem:[#allocation9 + $0x560] sm:$0xff]  ;;  %v2226_v61 = vld [vmem:[#allocation9 + $0x510] sm:$0xff] }
 0x218   :  { %3416 = vmatpush3.msra.mxu0 %v2137_v59  ;;  %3453 = vmatpush3.msra.mxu1 %v2168_v51  ;;  %v2036_v4 = vsel %vm1981_vm6, %v4669_v14, %v2929_v22  ;;  %v2222_v14 = vld [vmem:[#allocation9 + $0x4f0] sm:$0xff]  ;;  %v1994_v59 = vmin.f32 %v4703_v2, 0.0  ;;  %v2220_v51 = vld [vmem:[#allocation9 + $0x4e0] sm:$0xff]  ;;  %v2209_v22 = vld [vmem:[#allocation9 + $0x488] sm:$0xff]  ;;  %vm1983_vm10 = vcmp.gt.f32.partialorder %v4703_v2, 0.0 }
 0x219   :  { %3417 = vmatprep.subr.mxu0 %v2152_v23  ;;  %3454 = vmatprep.subr.mxu1 %v2183_v3  ;;  %v2034_v35 = vsel %vm1979_vm7, %v4674_v9, %v2927_v8  ;;  %v1996_v9 = vmin.f32 %v4699_v37, 0.0  ;;  %v2235_v23 = vld [vmem:[#allocation9 + $0x558] sm:$0xff]  ;;  %v2192_v21 = vld [vmem:[#allocation9 + $0x400] sm:$0xff] }
 0x21a   :  { %3418 = vmatpush3.msra.mxu0 %v2136_v6  ;;  %3455 = vmatpush3.msra.mxu1 %v2167_v63  ;;  %v2219_v3 = vld [vmem:[#allocation9 + $0x4d8] sm:$0xff] }
 0x21b   :  { %3419 = vmatprep.subr.mxu0 %v2151_v50  ;;  %3456 = vmatprep.subr.mxu1 %v2182_v32  ;;  %v3972_v1 = vpop.eup %3971  ;;  %v2017_v6 = vmul.f32 1.442695, %v1996_v9  ;;  %v2203_v63 = vld [vmem:[#allocation9 + $0x458] sm:$0xff]  ;;  %v2234_v50 = vld [vmem:[#allocation9 + $0x550] sm:$0xff]  ;;  %v2013_v32 = vmul.f32 1.442695, %v1994_v59 }
 0x21c   :  { %3420 = vmatpush3.msra.mxu0 %v2135_v12  ;;  %3457 = vmatpush3.msra.mxu1 %v2166_v18  ;;  %v2932_v30 = vadd.f32 -1.0, %v3972_v1  ;;  %v2218_v12 = vld [vmem:[#allocation9 + $0x4d0] sm:$0xff]  ;;  %v2193_v1 = vld [vmem:[#allocation9 + $0x408] sm:$0xff] }
 0x21d   :  { %3421 = vmatprep.subr.mxu0 %v2150_v15  ;;  %3458 = vmatprep.subr.mxu1 %v2181_v25  ;;  %v2202_v18 = vld [vmem:[#allocation9 + $0x450] sm:$0xff]  ;;  %v2233_v15 = vld [vmem:[#allocation9 + $0x548] sm:$0xff]  ;;  %3973 = vpow2.f32 %v2017_v6 }
 0x21e   :  { %3422 = vmatpush3.msra.mxu0 %v2134_v20  ;;  %3459 = vmatpush3.msra.mxu1 %v2165_v0  ;;  %v2039_v11 = vsel %vm1984_vm8, %v4680_v31, %v2932_v30  ;;  %v2204_v31 = vld [vmem:[#allocation9 + $0x460] sm:$0xff]  ;;  %v2217_v25 = vld [vmem:[#allocation9 + $0x4c8] sm:$0xff]  ;;  %3975 = vpow2.f32 %v2013_v32  ;;  %v2682_v9 = vld [vmem:[#allocation10 + $0x10] sm:$0xff] }
 0x21f   :  { %3423 = vmatprep.subr.mxu0 %v2149_v56  ;;  %3460 = vmatprep.subr.mxu1 %v2180_v49  ;;  %v2201_v20 = vld [vmem:[#allocation9 + $0x448] sm:$0xff]  ;;  %v2232_v0 = vld [vmem:[#allocation9 + $0x540] sm:$0xff] }
 0x220   :  { %3424 = vmatpush3.msra.mxu0 %v2133_v46  ;;  %3461 = vmatpush3.msra.mxu1 %v2164_v7  ;;  %v2216_v56 = vld [vmem:[#allocation9 + $0x4c0] sm:$0xff]  ;;  %v2231_v46 = vld [vmem:[#allocation9 + $0x538] sm:$0xff]  ;;  %v2693_v30 = vld [vmem:[#allocation10 + $0x68] sm:$0xff] }
 0x221   :  { %3425 = vmatprep.subr.mxu0 %v2148_v52  ;;  %3462 = vmatprep.subr.mxu1 %v2179_v34  ;;  %v2200_v49 = vld [vmem:[#allocation9 + $0x440] sm:$0xff]  ;;  %v2215_v7 = vld [vmem:[#allocation9 + $0x4b8] sm:$0xff]  ;;  %v2230_v34 = vld [vmem:[#allocation9 + $0x530] sm:$0xff] }
 0x222   :  { %3426 = vmatpush3.msra.mxu0 %v2132_v24  ;;  %3463 = vmatpush3.msra.mxu1 %v2163_v33  ;;  %v2199_v52 = vld [vmem:[#allocation9 + $0x438] sm:$0xff]  ;;  %v2214_v24 = vld [vmem:[#allocation9 + $0x4b0] sm:$0xff] }
 0x223   :  { %3427 = vmatprep.subr.mxu0 %v2147_v28  ;;  %3464 = vmatprep.subr.mxu1 %v2178_v44  ;;  %v2198_v33 = vld [vmem:[#allocation9 + $0x430] sm:$0xff]  ;;  %v2229_v28 = vld [vmem:[#allocation9 + $0x528] sm:$0xff] }
 0x224   :  { %3428 = vmatpush3.msra.mxu0 %v2131_v54  ;;  %3465 = vmatpush3.msra.mxu1 %v2162_v45  ;;  %v2213_v44 = vld [vmem:[#allocation9 + $0x4a8] sm:$0xff]  ;;  %v2212_v45 = vld [vmem:[#allocation9 + $0x4a0] sm:$0xff] }
 0x225   :  { %3429 = vmatprep.subr.mxu0 %v2146_v40  ;;  %3466 = vmatprep.subr.mxu1 %v2177_v41  ;;  %v2197_v54 = vld [vmem:[#allocation9 + $0x428] sm:$0xff]  ;;  %v2196_v40 = vld [vmem:[#allocation9 + $0x420] sm:$0xff]  ;;  %v2211_v41 = vld [vmem:[#allocation9 + $0x498] sm:$0xff] }
 0x226   :  { %3430 = vmatpush3.msra.mxu0 %v2130_v47  ;;  %3467 = vmatpush3.msra.mxu1 %v2161_v19  ;;  %v2195_v47 = vld [vmem:[#allocation9 + $0x418] sm:$0xff]  ;;  %v2210_v19 = vld [vmem:[#allocation9 + $0x490] sm:$0xff] }
 0x227   :  { %3431 = vmatprep.subr.mxu0 %v2145_v5  ;;  %3468 = vmatprep.subr.mxu1 %v2176_v55  ;;  %v2194_v55 = vld [vmem:[#allocation9 + $0x410] sm:$0xff] }
 0x228   :  { %3432 = vmatpush3.msra.mxu0 %v2129_v17  ;;  %3469 = vmatpush3.msra.mxu1 %v2160_v29  ;;  %v2225_v17 = vld [vmem:[#allocation9 + $0x508] sm:$0xff]  ;;  %v2224_v29 = vld [vmem:[#allocation9 + $0x500] sm:$0xff] }
 0x229   :  { %3433 = vmatprep.subr.mxu0 %v2144_v36  ;;  %2515 = vmatmul.mubr.f32.vlgmr.msra.gmra.mxu1 %v2036_v4  ;;  %v2695_v4 = vld [vmem:[#allocation10 + $0x78] sm:$0xff] }
 0x22a   :  { %3710 = vmatprep.subr.mxu1 %v4098_v42  ;;  %3434 = vmatpush3.msra.mxu0 %v2128_v57  ;;  %v3974_v58 = vpop.eup %3973 }
 0x22b   :  { %3711 = vmatpush3.msra.mxu1 %v2239_v27  ;;  %2445 = vmatmul.mubr.f32.vlgmr.msra.gmra.mxu0 %v2034_v35  ;;  %v3976_v5 = vpop.eup %3975  ;;  %v2933_v36 = vadd.f32 -1.0, %v3974_v58  ;;  %v2690_v35 = vld [vmem:[#allocation10 + $0x50] sm:$0xff] }
 0x22c   :  { %3473 = vmatprep.subr.mxu0 %v2223_v38  ;;  %3712 = vmatprep.subr.mxu1 %v4098_v42  ;;  %v2931_v8 = vadd.f32 -1.0, %v3976_v5  ;;  %v2694_v38 = vld [vmem:[#allocation10 + $0x70] sm:$0xff] }
 0x22d   :  { %3474 = vmatpush3.msra.mxu0 %v2207_v60  ;;  %2584 = vmatprep.mubr.f32.mxu0 %v2039_v11  ;;  %v2040_v57 = vsel %vm1985_vm9, %v4699_v37, %v2933_v36  ;;  %v2692_v60 = vld [vmem:[#allocation10 + $0x60] sm:$0xff]  ;;  %v2691_v37 = vld [vmem:[#allocation10 + $0x58] sm:$0xff]  ;;  %v2686_v11 = vld [vmem:[#allocation10 + $0x30] sm:$0xff] }
 0x22e   :  { %3713 = vmatpush3.msra.mxu1 %v2238_v43  ;;  %3475 = vmatprep.subr.mxu0 %v2222_v14  ;;  %v2038_v27 = vsel %vm1983_vm10, %v4703_v2, %v2931_v8  ;;  %v2689_v43 = vld [vmem:[#allocation10 + $0x48] sm:$0xff]  ;;  %v2688_v2 = vld [vmem:[#allocation10 + $0x40] sm:$0xff]  ;;  %v2687_v14 = vld [vmem:[#allocation10 + $0x38] sm:$0xff] }
 0x22f   :  { %3714 = vmatprep.subr.mxu1 %v4098_v42  ;;  %3476 = vmatpush3.msra.mxu0 %v2206_v39  ;;  %v2685_v39 = vld [vmem:[#allocation10 + $0x28] sm:$0xff] }
 0x230   :  { %3715 = vmatpush3.msra.mxu1 %v2237_v48  ;;  %3477 = vmatprep.subr.mxu0 %v2221_v13  ;;  %v2684_v48 = vld [vmem:[#allocation10 + $0x20] sm:$0xff]  ;;  %v2683_v13 = vld [vmem:[#allocation10 + $0x18] sm:$0xff] }
 0x231   :  { %3716 = vmatprep.subr.mxu1 %v4098_v42  ;;  %3478 = vmatpush3.msra.mxu0 %v2205_v10  ;;  %v2681_v10 = vld [vmem:[#allocation10 + $0x8] sm:$0xff] }
 0x232   :  { %3717 = vmatpush3.msra.mxu1 %v2236_v26  ;;  %3479 = vmatprep.subr.mxu0 %v2220_v51  ;;  %v2680_v26 = vld [vmem:[#allocation10] sm:$0xff] }
 0x233   :  { %3718 = vmatprep.subr.mxu1 %v4098_v42  ;;  %3480 = vmatpush3.msra.mxu0 %v2204_v31 }
 0x234   :  { %3719 = vmatpush3.msra.mxu1 %v2235_v23  ;;  %3481 = vmatprep.subr.mxu0 %v2219_v3 }
 0x235   :  { %3720 = vmatprep.subr.mxu1 %v4098_v42  ;;  %3482 = vmatpush3.msra.mxu0 %v2203_v63 }
 0x236   :  { %3721 = vmatpush3.msra.mxu1 %v2234_v50  ;;  %3483 = vmatprep.subr.mxu0 %v2218_v12 }
 0x237   :  { %3722 = vmatprep.subr.mxu1 %v4098_v42  ;;  %3484 = vmatpush3.msra.mxu0 %v2202_v18 }
 0x238   :  { %3723 = vmatpush3.msra.mxu1 %v2233_v15  ;;  %3485 = vmatprep.subr.mxu0 %v2217_v25 }
 0x239   :  { %3724 = vmatprep.subr.mxu1 %v4098_v42  ;;  %3486 = vmatpush3.msra.mxu0 %v2201_v20 }
 0x23a   :  { %3725 = vmatpush3.msra.mxu1 %v2232_v0  ;;  %3487 = vmatprep.subr.mxu0 %v2216_v56 }
 0x23b   :  { %3726 = vmatprep.subr.mxu1 %v4098_v42  ;;  %3488 = vmatpush3.msra.mxu0 %v2200_v49 }
 0x23c   :  { %3727 = vmatpush3.msra.mxu1 %v2231_v46  ;;  %3489 = vmatprep.subr.mxu0 %v2215_v7 }
 0x23d   :  { %3728 = vmatprep.subr.mxu1 %v4098_v42  ;;  %3490 = vmatpush3.msra.mxu0 %v2199_v52 }
 0x23e   :  { %3729 = vmatpush3.msra.mxu1 %v2230_v34  ;;  %3491 = vmatprep.subr.mxu0 %v2214_v24  ;;  %v2934_v34 = vld [vmem:[%s4758_s3] ss:$0 sm:$0xff]  ;;  %s4060_s3 = scalar_lea.vmem %s2781_s24, 128 }
 0x23f   :  { %3730 = vmatprep.subr.mxu1 %v4098_v42  ;;  %3492 = vmatpush3.msra.mxu0 %v2198_v33  ;;  %p4061_p6 = scmp.ne.s32.totalorder %s2781_s24, %s4060_s3  ;;  %p4066_p8 = scmp.lt.s32.totalorder %s4060_s3, %s4060_s3 }
 0x240   :  { %3731 = vmatpush3.msra.mxu1 %v2229_v28  ;;  %3493 = vmatprep.subr.mxu0 %v2213_v44 }
 0x241   :  { %3732 = vmatprep.subr.mxu1 %v4098_v42  ;;  %3494 = vmatpush3.msra.mxu0 %v2197_v54  ;;  %p4067_p9 = por %p4066_p8, %p4065_p7 }
 0x242   :  { %3733 = vmatpush3.msra.mxu1 %v2228_v62  ;;  %3495 = vmatprep.subr.mxu0 %v2212_v45 }
 0x243   :  { %3734 = vmatprep.subr.mxu1 %v4098_v42  ;;  %3496 = vmatpush3.msra.mxu0 %v2196_v40  ;;  %v2936_v40 = vld [vmem:[%s4760_s5] ss:$0 sm:$0xff]  ;;  %p4068_p10 = pnand %p4067_p9, %p4061_p6 }
 0x244   :  { %3735 = vmatpush3.msra.mxu1 %v2227_v16  ;;  %3497 = vmatprep.subr.mxu0 %v2211_v41 }
 0x245   :  { %3736 = vmatprep.subr.mxu1 %v4098_v42  ;;  %3498 = vmatpush3.msra.mxu0 %v2195_v47 }
 0x246   :  { %3737 = vmatpush3.msra.mxu1 %v2226_v61  ;;  %3499 = vmatprep.subr.mxu0 %v2210_v19 }
 0x247   :  { %3738 = vmatprep.subr.mxu1 %v4098_v42  ;;  %3500 = vmatpush3.msra.mxu0 %v2194_v55 }
 0x248   :  { %3739 = vmatpush3.msra.mxu1 %v2225_v17  ;;  %3501 = vmatprep.subr.mxu0 %v2209_v22 }
 0x249   :  { %3740 = vmatprep.subr.mxu1 %v4098_v42  ;;  %3502 = vmatpush3.msra.mxu0 %v2193_v1 }
 0x24a   :  { %3741 = vmatpush3.msra.mxu1 %v2224_v29  ;;  %3742 = vmatprep.mubr.msk.f32.mxu1 %vm4099_vm11, %v4098_v42 }
 0x24b   :  { %3503 = vmatprep.subr.mxu0 %v2208_v53  ;;  %3743 = vmatmul.mubr.f32.vlgmr.msra.gmra.mxu1 %v2040_v57 }
 0x24c   :  { %3504 = vmatpush3.msra.mxu0 %v2192_v21 }
 0x24d   :  { %2585 = vmatmul.mubr.f32.vlgmr.msra.gmra.mxu0 %v2038_v27  ;;  %3745 = vmatprep.subr.mxu0 %v4098_v42 }
 0x24e   :  { %3777 = vmatprep.mubr.msk.f32.mxu0 %vm4099_vm11, %v4098_v42  ;;  %3746 = vmatpush3.msra.mxu0 %v2695_v4 }
 0x24f   :  { %3747 = vmatprep.subr.mxu0 %v4098_v42 }
 0x250   :  { %3748 = vmatpush3.msra.mxu0 %v2694_v38 }
 0x251   :  { %3749 = vmatprep.subr.mxu0 %v4098_v42 }
 0x252   :  { %3750 = vmatpush3.msra.mxu0 %v2693_v30 }
 0x253   :  { %3751 = vmatprep.subr.mxu0 %v4098_v42 }
 0x254   :  { %3752 = vmatpush3.msra.mxu0 %v2692_v60 }
 0x255   :  { %3753 = vmatprep.subr.mxu0 %v4098_v42 }
 0x256   :  { %3754 = vmatpush3.msra.mxu0 %v2691_v37 }
 0x257   :  { %3755 = vmatprep.subr.mxu0 %v4098_v42 }
 0x258   :  { %3756 = vmatpush3.msra.mxu0 %v2690_v35 }
 0x259   :  { %3757 = vmatprep.subr.mxu0 %v4098_v42 }
 0x25a   :  { %3758 = vmatpush3.msra.mxu0 %v2689_v43 }
 0x25b   :  { %3759 = vmatprep.subr.mxu0 %v4098_v42 }
 0x25c   :  { %3760 = vmatpush3.msra.mxu0 %v2688_v2 }
 0x25d   :  { %3761 = vmatprep.subr.mxu0 %v4098_v42 }
 0x25e   :  { %3762 = vmatpush3.msra.mxu0 %v2687_v14 }
 0x25f   :  { %3763 = vmatprep.subr.mxu0 %v4098_v42 }
 0x260   :  { %3764 = vmatpush3.msra.mxu0 %v2686_v11 }
 0x261   :  { %3765 = vmatprep.subr.mxu0 %v4098_v42 }
 0x262   :  { %3766 = vmatpush3.msra.mxu0 %v2685_v39 }
 0x263   :  { %3767 = vmatprep.subr.mxu0 %v4098_v42 }
 0x264   :  { %3768 = vmatpush3.msra.mxu0 %v2684_v48 }
 0x265   :  { %3769 = vmatprep.subr.mxu0 %v4098_v42 }
 0x266   :  { %3770 = vmatpush3.msra.mxu0 %v2683_v13 }
 0x267   :  { %3771 = vmatprep.subr.mxu0 %v4098_v42 }
 0x268   :  { %3772 = vmatpush3.msra.mxu0 %v2682_v9 }
 0x269   :  { %3773 = vmatprep.subr.mxu0 %v4098_v42 }
 0x26a   :  { %3774 = vmatpush3.msra.mxu0 %v2681_v10 }
 0x26b   :  { %3775 = vmatprep.subr.mxu0 %v4098_v42 }
 0x26c   :  { %3776 = vmatpush3.msra.mxu0 %v2680_v26 }
 0x2c8   :  { %v3400_v31 = vpop.f32.mrf.mxu1 }
 0x2ca   :  { %v3365_v59 = vpop.f32.mrf.mxu0  ;;  %v3401_v3 = vpop.f32.mrf.mxu1 }
 0x2cb   :  { %v3402_v32 = vadd.f32 %v3401_v3, %v3400_v31 }
 0x2cc   :  { %v3366_v51 = vpop.f32.mrf.mxu0 }
 0x2cd   :  { %v3367_v63 = vadd.f32 %v3366_v51, %v3365_v59 }
 0x2cf   :  { %v2377_v18 = vadd.f32 %v3402_v32, %v3367_v63 }
 0x2e9   :  { %v3470_v50 = vpop.f32.mrf.mxu1 }
 0x2eb   :  { %v3435_v23 = vpop.f32.mrf.mxu0  ;;  %v3471_v15 = vpop.f32.mrf.mxu1 }
 0x2ec   :  { %v3472_v56 = vadd.f32 %v3471_v15, %v3470_v50 }
 0x2ed   :  { %v3436_v6 = vpop.f32.mrf.mxu0 }
 0x2ee   :  { %v3437_v12 = vadd.f32 %v3436_v6, %v3435_v23 }
 0x2f0   :  { %v2447_v25 = vadd.f32 %v3437_v12, %v2377_v18 }
 0x2f2   :  { %v2517_v42 = vadd.f32 %v3472_v56, %v2447_v25 }
 0x30b   :  { %v2656_v20 = vpop.f32.mrf.mxu1 }
 0x30d   :  { %v3505_v0 = vpop.f32.mrf.mxu0  ;;  %v3744_v49 = vpop.f32.mrf.mxu1 }
 0x30f   :  { %v3506_v46 = vpop.f32.mrf.mxu0 }
 0x310   :  { %v3507_v7 = vadd.f32 %v3506_v46, %v3505_v0 }
 0x312   :  { %v2587_v52 = vadd.f32 %v3507_v7, %v2517_v42 }
 0x314   :  { %v2657_v24 = vadd.f32 %v2656_v20, %v2587_v52 }
 0x316   :  { %v2673_v33 = vadd.f32 %v2934_v34, %v2657_v24 }
 0x318   :  { %v2675_v28 = vmin.f32 %v2673_v33, 0.0  ;;  %vm2674_vm12 = vcmp.gt.f32.partialorder %v2673_v33, 0.0 }
 0x31a   :  { %v2676_v44 = vmul.f32 1.442695, %v2675_v28 }
 0x31c   :  { %3977 = vpow2.f32 %v2676_v44 }
 0x329   :  { %v3978_v54 = vpop.eup %3977 }
 0x32a   :  { %v2935_v62 = vadd.f32 -1.0, %v3978_v54 }
 0x32c   :  { %v2679_v45 = vsel %vm2674_vm12, %v2673_v33, %v2935_v62 }
 0x32d   :  { %3778 = vmatmul.mubr.f32.vlgmr.msra.gmra.mxu0 %v2679_v45 }
 0x3ed   :  { %v2769_v16 = vpop.f32.mrf.mxu0 }
 0x3ee   :  { %v2770_v41 = vadd.f32 %v2936_v40, %v2769_v16 }
 0x3ef   :  { %v3779_v47 = vpop.f32.mrf.mxu0 }
 0x3f0   :  { %2773 = vst [vmem:[#allocation12] sm:$0xff] %v2770_v41 }
 0x3f1   :  { %4071 = shalt.err (!%p4068_p10)
}
 0x3f2   :  { %2783 = dma.vmem_to_hbm [thread:$0]  %s2781_s24, 128, %s4761_s6, [#allocation6]  }
 0x3f3   :  { %4086 = dma.done.wait [#allocation6], 128  }
 0x3f4   :  { %4087 = vsyncadd [#allocation6], 4294967168 }
 0x3f5   :  { %2787 = vsyncpa [#allocation5], 1 }
 0x3f6   :  { %2788 = vsyncpa [#allocation8], 1 }
 0x3f7   :  { %2789 = vsyncpa [#allocation11], 1 }
 0x3f8   :  { %2790 = vsyncpa [#allocation6], 1 }

</bundles_post_ra>
